<compile_context>
chip_gen: v5e
topology: v5e:2x2
jax: 0.10.0
libtpu: 0.0.40
codegen_flags: <defaults>
</compile_context>

<pallas_src>
import functools

import jax
import jax.numpy as jnp
from jax import lax
from jax.experimental import pallas as pl
from jax.experimental.pallas import tpu as pltpu


_LANE_SPAN_TARGET = 512        # lanes per img block (~85% HBM-roofline tile point)
_IMG_BLOCK_BUDGET = 1 << 20    # ~1M elems (~4 MiB f32) per img block, x2 buffered


def _choose_chunk(nbins, bin_size, align, max_span):
    """Largest bins-per-chunk d with d | nbins, (d*bin_size) % align == 0 and
    d*bin_size <= max_span.  Falls back to the full extent (always a legal
    trailing BlockSpec dim) when no aligned divisor fits."""
    best = None
    for d in range(1, nbins + 1):
        if nbins % d:
            continue
        span = d * bin_size
        if span % align or span > max_span:
            continue
        best = d
    return best if best is not None else nbins


def _fold_max_blocks(x, nblocks, bsize, axis):
    """Max-reduce `nblocks` contiguous length-`bsize` blocks along `axis` down
    to a single block with a halving tree: O(log nblocks) code size and slice
    shifts (perf review: avoid long unrolled per-bin slice chains)."""
    carry = None
    n = nblocks
    while n > 1:
        half = n // 2
        lo = lax.slice_in_dim(x, 0, half * bsize, axis=axis)
        hi = lax.slice_in_dim(x, half * bsize, 2 * half * bsize, axis=axis)
        if n % 2:
            tail = lax.slice_in_dim(x, 2 * half * bsize, n * bsize, axis=axis)
            carry = tail if carry is None else jnp.maximum(carry, tail)
        x = jnp.maximum(lo, hi)
        n = half
    if carry is not None:
        x = jnp.maximum(x, carry)
    return x


def _evil_kernel(imgw_ref, xavg_ref, out_ref, acc_ref, *, evil_pow,
                 evil_offset, evil_scale, oh, ow, ch, cw, n_ci):
    # imgw_ref: (1, Ci, 9, ch*oh, cw*ow) chunk of the (B, Ci, 9, hb*oh, wb*ow)
    #           pooled map; rows h_bin-major/oh-minor, lanes w_bin-major/
    #           ow-minor -> adaptive-max bins are contiguous sublane/lane blocks.
    # xavg_ref: (1, Cx, oh, ow)  pre-reduced AdaptiveAvgPool2d(x)
    # out_ref:  (1, Cx, oh, ow)
    # acc_ref:  (Ci, oh, ow) f32 running per-channel max across bin chunks.
    hc = pl.program_id(1)
    wc = pl.program_id(2)

    @pl.when(jnp.logical_and(hc == 0, wc == 0))
    def _init():
        acc_ref[...] = jnp.full(acc_ref.shape, -jnp.inf, acc_ref.dtype)

    # (e**img - off)**p and (e**(-img) - off)**p summed over the 3x3 window,
    # accumulated per window cell k -> no 9x-size temporaries live (review #1).
    # Single EUP exp; exp(-img) is its exact reciprocal.
    a_s = None
    b_s = None
    for k in range(9):
        t = jnp.exp(imgw_ref[0, :, k, :, :].astype(jnp.float32) * evil_scale)
        a = (t - evil_offset) ** evil_pow          # integer_pow -> multiply chain
        b = (pl.reciprocal(t) - evil_offset) ** evil_pow
        a_s = a if a_s is None else a_s + a
        b_s = b if b_s is None else b_s + b
    bw = (a_s * b_s) * (1.0 / 81.0)      # (Ci, ch*oh, cw*ow); both 1/9 folded

    # AdaptiveMaxPool2d over this chunk's bins: halving folds over contiguous
    # oh-row (sublane) and ow-col (lane) blocks, then fold into the running max.
    mh = _fold_max_blocks(bw, ch, oh, axis=1)      # (Ci, oh, cw*ow)
    mx = _fold_max_blocks(mh, cw, ow, axis=2)      # (Ci, oh, ow)
    acc_ref[...] = jnp.maximum(acc_ref[...], mx)

    @pl.when(jnp.logical_and(hc == pl.num_programs(1) - 1,
                             wc == pl.num_programs(2) - 1))
    def _finalize():
        m = acc_ref[...]
        filtered = m[0]
        for c in range(1, n_ci):                   # .min(dim=1): leading axis, cheap
            filtered = jnp.minimum(filtered, m[c])
        xavg = xavg_ref[...].astype(jnp.float32)   # (1, Cx, oh, ow)
        out_ref[...] = (xavg + filtered[None, None, :, :]).astype(out_ref.dtype)


def evil_adaptive_avg_pool2d(x, img, output_size, *, evil_pow=10,
                             evil_offset=1.0, evil_scale=1.0):
    assert isinstance(evil_pow, int), "evil_pow must stay a Python int"
    oh, ow = output_size
    B, Cx, Hx, Wx = x.shape
    Bi, Ci, Hi, Wi = img.shape
    assert B == Bi
    assert Hi % 3 == 0 and Wi % 3 == 0, "AvgPool2d(3): stride 3, no padding"
    Hp, Wp = Hi // 3, Wi // 3
    # TODO(synk): only the divisible case (uniform non-overlapping adaptive
    # bins) is implemented; PyTorch's ragged-bin adaptive pooling is not.
    assert Hp % oh == 0 and Wp % ow == 0 and Hx % oh == 0 and Wx % ow == 0
    hb, wb = Hp // oh, Wp // ow          # adaptive-max bins per output row/col
    hbx, wbx = Hx // oh, Wx // ow        # adaptive-avg bins per output row/col

    # x path: trivial & memory-bound -> XLA runs it at HBM roofline (review #9);
    # only the tiny pooled result enters the kernel, freeing VMEM for img.
    xavg = x.astype(jnp.float32).reshape(B, Cx, oh, hbx, ow, wbx).mean(axis=(3, 5))

    # img layout glue (no arithmetic; fusable into the pallas operand):
    # (B, Ci, 9, hb*oh, wb*ow) — 3x3 window on a leading (non-vreg) axis,
    # pooled map lane-dense with bins as contiguous sublane/lane blocks.
    img_w = img.reshape(B, Ci, oh, hb, 3, ow, wb, 3)
    img_w = img_w.transpose(0, 1, 4, 7, 3, 2, 6, 5)   # (B,Ci,3h,3w,hb,oh,wb,ow)
    img_w = img_w.reshape(B, Ci, 9, hb * oh, wb * ow)

    # Bin-chunk tiling: trailing block dims are multiples of (8,128) or the
    # full extent, and the img block stays ~<=4 MiB (double-buffered) so the
    # VMEM budget holds on v5e/v6e (128 MiB) and v7x (64 MiB) alike.
    cw = _choose_chunk(wb, ow, 128, _LANE_SPAN_TARGET)
    tw = cw * ow
    max_rows = max(8, _IMG_BLOCK_BUDGET // max(1, Ci * 9 * tw))
    ch = _choose_chunk(hb, oh, 8, max_rows)
    th = ch * oh
    n_hc, n_wc = hb // ch, wb // cw

    kernel = functools.partial(
        _evil_kernel, evil_pow=evil_pow, evil_offset=evil_offset,
        evil_scale=evil_scale, oh=oh, ow=ow, ch=ch, cw=cw, n_ci=Ci)

    img_elems = B * Ci * Hi * Wi
    out_bytes = B * Cx * oh * ow * x.dtype.itemsize
    cost = pl.CostEstimate(
        flops=22 * img_elems,                        # pow chains + sums + maxes
        transcendentals=2 * img_elems,               # exp + reciprocal
        bytes_accessed=img.size * img.dtype.itemsize + xavg.size * 4 + out_bytes)

    # TODO(synk): on v7x with B == 1 one TensorCore idles; a core-parallel
    # split of Ci (partial max per core + channel-min epilogue) would fix it.
    return pl.pallas_call(
        kernel,
        out_shape=jax.ShapeDtypeStruct((B, Cx, oh, ow), x.dtype),
        grid=(B, n_hc, n_wc),
        in_specs=[
            pl.BlockSpec((1, Ci, 9, th, tw), lambda b, i, j: (b, 0, 0, i, j)),
            pl.BlockSpec((1, Cx, oh, ow), lambda b, i, j: (b, 0, 0, 0)),
        ],
        out_specs=pl.BlockSpec((1, Cx, oh, ow), lambda b, i, j: (b, 0, 0, 0)),
        scratch_shapes=[pltpu.VMEM((Ci, oh, ow), jnp.float32)],
        compiler_params=pltpu.CompilerParams(
            dimension_semantics=("parallel", "arbitrary", "arbitrary"),
            allow_input_fusion=[True, False],
            vmem_limit_bytes=32 * 1024 * 1024),
        cost_estimate=cost,
    )(img_w, xavg)


def _reference(x, img, output_size, *, evil_pow=10, evil_offset=1.0, evil_scale=1.0):
    """Pure-JAX reference matching the PyTorch forward (divisible shapes)."""
    oh, ow = output_size
    B, Cx, Hx, Wx = x.shape
    _, Ci, Hi, Wi = img.shape
    img = img * evil_scale
    a = (jnp.exp(img) - evil_offset) ** evil_pow
    b = (jnp.exp(-img) - evil_offset) ** evil_pow

    def avgpool3(t):
        Bb, C, H, W = t.shape
        return t.reshape(Bb, C, H // 3, 3, W // 3, 3).mean(axis=(3, 5))

    bw = avgpool3(a) * avgpool3(b)
    Hp, Wp = Hi // 3, Wi // 3
    mx = bw.reshape(B, Ci, oh, Hp // oh, ow, Wp // ow).max(axis=(3, 5))
    filtered = mx.min(axis=1)
    xavg = x.reshape(B, Cx, oh, Hx // oh, ow, Wx // ow).mean(axis=(3, 5))
    return xavg + filtered[:, None]


if __name__ == "__main__":
    # output_size = (2, 2) for both adaptive pools (ctor args of the module)
    output_size = (2, 2)
    B, Cx, Hx, Wx = 2, 4, 16, 16        # x:   (2, 4, 16, 16)
    Ci, Hi, Wi = 3, 12, 12              # img: (2, 3, 12, 12)

    key = jax.random.PRNGKey(0)
    kx, kimg = jax.random.split(key)
    x = jax.random.normal(kx, (B, Cx, Hx, Wx), dtype=jnp.float32)
    img = jax.random.normal(kimg, (B, Ci, Hi, Wi), dtype=jnp.float32)

    fn = jax.jit(functools.partial(
        evil_adaptive_avg_pool2d, output_size=output_size,
        evil_pow=10, evil_offset=1.0, evil_scale=1.0))
    out = jax.block_until_ready(fn(x, img))

    ref = _reference(x, img, output_size,
                     evil_pow=10, evil_offset=1.0, evil_scale=1.0)
    assert out.shape == (B, Cx, *output_size)
    assert jnp.allclose(out, ref, rtol=1e-3, atol=1e-3), (
        f"max abs err {jnp.max(jnp.abs(out - ref))}")

    print("KERNEL_OK")
</pallas_src>

<mosaic_0001>
module attributes {stable_mosaic.version = 11 : i64} {
  func.func @_evil_kernel(%arg0: i32, %arg1: i32, %arg2: i32, %arg3: memref<1x3x9x4x4xf32, #tpu.memory_space<vmem>>, %arg4: memref<1x4x2x2xf32, #tpu.memory_space<vmem>>, %arg5: memref<1x4x2x2xf32, #tpu.memory_space<vmem>>, %arg6: memref<3x2x2xf32, #tpu.memory_space<vmem>>) attributes {dimension_semantics = [#tpu.dimension_semantics<parallel>, #tpu.dimension_semantics<arbitrary>, #tpu.dimension_semantics<arbitrary>], iteration_bounds = array<i64: 2, 1, 1>, scalar_prefetch = 0 : i64, scratch_operands = 1 : i64, tpu.core_type = #tpu.core_type<tc>, window_params = [{transform_indices = @transform_0, window_bounds = array<i64: 1, 3, 9, 4, 4>}, {transform_indices = @transform_1, window_bounds = array<i64: 1, 4, 2, 2>}, {transform_indices = @transform_2, window_bounds = array<i64: 1, 4, 2, 2>}]} {
    %c0_i32 = arith.constant 0 : i32
    %0 = arith.cmpi eq, %arg1, %c0_i32 : i32
    %c0_i32_0 = arith.constant 0 : i32
    %1 = arith.cmpi eq, %arg2, %c0_i32_0 : i32
    %2 = arith.andi %0, %1 : i1
    %3 = arith.extui %2 : i1 to i32
    %c0_i32_1 = arith.constant 0 : i32
    %4 = arith.cmpi ne, %3, %c0_i32_1 : i32
    scf.if %4 {
      %cst_74 = arith.constant 0xFF800000 : f32
      %200 = vector.broadcast %cst_74 : f32 to vector<3x2x2xf32>
      %c0_75 = arith.constant 0 : index
      %c0_76 = arith.constant 0 : index
      %c0_77 = arith.constant 0 : index
      %201 = vector.load %arg6[%c0_75, %c0_76, %c0_77] : memref<3x2x2xf32, #tpu.memory_space<vmem>>, vector<3x2x2xf32>
      tpu.vector_store %arg6[%c0_75, %c0_76, %c0_77], %200 {strides = array<i32>} : memref<3x2x2xf32, #tpu.memory_space<vmem>>, vector<3x2x2xf32>,
    } else {
    }
    %c0 = arith.constant 0 : index
    %c0_2 = arith.constant 0 : index
    %c0_3 = arith.constant 0 : index
    %c0_4 = arith.constant 0 : index
    %c0_5 = arith.constant 0 : index
    %5 = vector.load %arg3[%c0, %c0_2, %c0_3, %c0_4, %c0_5] : memref<1x3x9x4x4xf32, #tpu.memory_space<vmem>>, vector<1x3x1x4x4xf32>
    %6 = vector.shape_cast %5 : vector<1x3x1x4x4xf32> to vector<3x4x4xf32>
    %cst = arith.constant 1.000000e+00 : f32
    %7 = vector.broadcast %cst : f32 to vector<3x4x4xf32>
    %8 = arith.mulf %6, %7 : vector<3x4x4xf32>
    %9 = math.exp %8 : vector<3x4x4xf32>
    %cst_6 = arith.constant 1.000000e+00 : f32
    %10 = vector.broadcast %cst_6 : f32 to vector<3x4x4xf32>
    %11 = arith.subf %9, %10 : vector<3x4x4xf32>
    %12 = arith.mulf %11, %11 : vector<3x4x4xf32>
    %13 = arith.mulf %12, %12 : vector<3x4x4xf32>
    %14 = arith.mulf %13, %13 : vector<3x4x4xf32>
    %15 = arith.mulf %12, %14 : vector<3x4x4xf32>
    %16 = tpu.reciprocal %9 : vector<3x4x4xf32> -> vector<3x4x4xf32>
    %cst_7 = arith.constant 1.000000e+00 : f32
    %17 = vector.broadcast %cst_7 : f32 to vector<3x4x4xf32>
    %18 = arith.subf %16, %17 : vector<3x4x4xf32>
    %19 = arith.mulf %18, %18 : vector<3x4x4xf32>
    %20 = arith.mulf %19, %19 : vector<3x4x4xf32>
    %21 = arith.mulf %20, %20 : vector<3x4x4xf32>
    %22 = arith.mulf %19, %21 : vector<3x4x4xf32>
    %c0_8 = arith.constant 0 : index
    %c0_9 = arith.constant 0 : index
    %c1 = arith.constant 1 : index
    %c0_10 = arith.constant 0 : index
    %c0_11 = arith.constant 0 : index
    %23 = vector.load %arg3[%c0_8, %c0_9, %c1, %c0_10, %c0_11] : memref<1x3x9x4x4xf32, #tpu.memory_space<vmem>>, vector<1x3x1x4x4xf32>
    %24 = vector.shape_cast %23 : vector<1x3x1x4x4xf32> to vector<3x4x4xf32>
    %cst_12 = arith.constant 1.000000e+00 : f32
    %25 = vector.broadcast %cst_12 : f32 to vector<3x4x4xf32>
    %26 = arith.mulf %24, %25 : vector<3x4x4xf32>
    %27 = math.exp %26 : vector<3x4x4xf32>
    %cst_13 = arith.constant 1.000000e+00 : f32
    %28 = vector.broadcast %cst_13 : f32 to vector<3x4x4xf32>
    %29 = arith.subf %27, %28 : vector<3x4x4xf32>
    %30 = arith.mulf %29, %29 : vector<3x4x4xf32>
    %31 = arith.mulf %30, %30 : vector<3x4x4xf32>
    %32 = arith.mulf %31, %31 : vector<3x4x4xf32>
    %33 = arith.mulf %30, %32 : vector<3x4x4xf32>
    %34 = tpu.reciprocal %27 : vector<3x4x4xf32> -> vector<3x4x4xf32>
    %cst_14 = arith.constant 1.000000e+00 : f32
    %35 = vector.broadcast %cst_14 : f32 to vector<3x4x4xf32>
    %36 = arith.subf %34, %35 : vector<3x4x4xf32>
    %37 = arith.mulf %36, %36 : vector<3x4x4xf32>
    %38 = arith.mulf %37, %37 : vector<3x4x4xf32>
    %39 = arith.mulf %38, %38 : vector<3x4x4xf32>
    %40 = arith.mulf %37, %39 : vector<3x4x4xf32>
    %41 = arith.addf %15, %33 : vector<3x4x4xf32>
    %42 = arith.addf %22, %40 : vector<3x4x4xf32>
    %c0_15 = arith.constant 0 : index
    %c0_16 = arith.constant 0 : index
    %c2 = arith.constant 2 : index
    %c0_17 = arith.constant 0 : index
    %c0_18 = arith.constant 0 : index
    %43 = vector.load %arg3[%c0_15, %c0_16, %c2, %c0_17, %c0_18] : memref<1x3x9x4x4xf32, #tpu.memory_space<vmem>>, vector<1x3x1x4x4xf32>
    %44 = vector.shape_cast %43 : vector<1x3x1x4x4xf32> to vector<3x4x4xf32>
    %cst_19 = arith.constant 1.000000e+00 : f32
    %45 = vector.broadcast %cst_19 : f32 to vector<3x4x4xf32>
    %46 = arith.mulf %44, %45 : vector<3x4x4xf32>
    %47 = math.exp %46 : vector<3x4x4xf32>
    %cst_20 = arith.constant 1.000000e+00 : f32
    %48 = vector.broadcast %cst_20 : f32 to vector<3x4x4xf32>
    %49 = arith.subf %47, %48 : vector<3x4x4xf32>
    %50 = arith.mulf %49, %49 : vector<3x4x4xf32>
    %51 = arith.mulf %50, %50 : vector<3x4x4xf32>
    %52 = arith.mulf %51, %51 : vector<3x4x4xf32>
    %53 = arith.mulf %50, %52 : vector<3x4x4xf32>
    %54 = tpu.reciprocal %47 : vector<3x4x4xf32> -> vector<3x4x4xf32>
    %cst_21 = arith.constant 1.000000e+00 : f32
    %55 = vector.broadcast %cst_21 : f32 to vector<3x4x4xf32>
    %56 = arith.subf %54, %55 : vector<3x4x4xf32>
    %57 = arith.mulf %56, %56 : vector<3x4x4xf32>
    %58 = arith.mulf %57, %57 : vector<3x4x4xf32>
    %59 = arith.mulf %58, %58 : vector<3x4x4xf32>
    %60 = arith.mulf %57, %59 : vector<3x4x4xf32>
    %61 = arith.addf %41, %53 : vector<3x4x4xf32>
    %62 = arith.addf %42, %60 : vector<3x4x4xf32>
    %c0_22 = arith.constant 0 : index
    %c0_23 = arith.constant 0 : index
    %c3 = arith.constant 3 : index
    %c0_24 = arith.constant 0 : index
    %c0_25 = arith.constant 0 : index
    %63 = vector.load %arg3[%c0_22, %c0_23, %c3, %c0_24, %c0_25] : memref<1x3x9x4x4xf32, #tpu.memory_space<vmem>>, vector<1x3x1x4x4xf32>
    %64 = vector.shape_cast %63 : vector<1x3x1x4x4xf32> to vector<3x4x4xf32>
    %cst_26 = arith.constant 1.000000e+00 : f32
    %65 = vector.broadcast %cst_26 : f32 to vector<3x4x4xf32>
    %66 = arith.mulf %64, %65 : vector<3x4x4xf32>
    %67 = math.exp %66 : vector<3x4x4xf32>
    %cst_27 = arith.constant 1.000000e+00 : f32
    %68 = vector.broadcast %cst_27 : f32 to vector<3x4x4xf32>
    %69 = arith.subf %67, %68 : vector<3x4x4xf32>
    %70 = arith.mulf %69, %69 : vector<3x4x4xf32>
    %71 = arith.mulf %70, %70 : vector<3x4x4xf32>
    %72 = arith.mulf %71, %71 : vector<3x4x4xf32>
    %73 = arith.mulf %70, %72 : vector<3x4x4xf32>
    %74 = tpu.reciprocal %67 : vector<3x4x4xf32> -> vector<3x4x4xf32>
    %cst_28 = arith.constant 1.000000e+00 : f32
    %75 = vector.broadcast %cst_28 : f32 to vector<3x4x4xf32>
    %76 = arith.subf %74, %75 : vector<3x4x4xf32>
    %77 = arith.mulf %76, %76 : vector<3x4x4xf32>
    %78 = arith.mulf %77, %77 : vector<3x4x4xf32>
    %79 = arith.mulf %78, %78 : vector<3x4x4xf32>
    %80 = arith.mulf %77, %79 : vector<3x4x4xf32>
    %81 = arith.addf %61, %73 : vector<3x4x4xf32>
    %82 = arith.addf %62, %80 : vector<3x4x4xf32>
    %c0_29 = arith.constant 0 : index
    %c0_30 = arith.constant 0 : index
    %c4 = arith.constant 4 : index
    %c0_31 = arith.constant 0 : index
    %c0_32 = arith.constant 0 : index
    %83 = vector.load %arg3[%c0_29, %c0_30, %c4, %c0_31, %c0_32] : memref<1x3x9x4x4xf32, #tpu.memory_space<vmem>>, vector<1x3x1x4x4xf32>
    %84 = vector.shape_cast %83 : vector<1x3x1x4x4xf32> to vector<3x4x4xf32>
    %cst_33 = arith.constant 1.000000e+00 : f32
    %85 = vector.broadcast %cst_33 : f32 to vector<3x4x4xf32>
    %86 = arith.mulf %84, %85 : vector<3x4x4xf32>
    %87 = math.exp %86 : vector<3x4x4xf32>
    %cst_34 = arith.constant 1.000000e+00 : f32
    %88 = vector.broadcast %cst_34 : f32 to vector<3x4x4xf32>
    %89 = arith.subf %87, %88 : vector<3x4x4xf32>
    %90 = arith.mulf %89, %89 : vector<3x4x4xf32>
    %91 = arith.mulf %90, %90 : vector<3x4x4xf32>
    %92 = arith.mulf %91, %91 : vector<3x4x4xf32>
    %93 = arith.mulf %90, %92 : vector<3x4x4xf32>
    %94 = tpu.reciprocal %87 : vector<3x4x4xf32> -> vector<3x4x4xf32>
    %cst_35 = arith.constant 1.000000e+00 : f32
    %95 = vector.broadcast %cst_35 : f32 to vector<3x4x4xf32>
    %96 = arith.subf %94, %95 : vector<3x4x4xf32>
    %97 = arith.mulf %96, %96 : vector<3x4x4xf32>
    %98 = arith.mulf %97, %97 : vector<3x4x4xf32>
    %99 = arith.mulf %98, %98 : vector<3x4x4xf32>
    %100 = arith.mulf %97, %99 : vector<3x4x4xf32>
    %101 = arith.addf %81, %93 : vector<3x4x4xf32>
    %102 = arith.addf %82, %100 : vector<3x4x4xf32>
    %c0_36 = arith.constant 0 : index
    %c0_37 = arith.constant 0 : index
    %c5 = arith.constant 5 : index
    %c0_38 = arith.constant 0 : index
    %c0_39 = arith.constant 0 : index
    %103 = vector.load %arg3[%c0_36, %c0_37, %c5, %c0_38, %c0_39] : memref<1x3x9x4x4xf32, #tpu.memory_space<vmem>>, vector<1x3x1x4x4xf32>
    %104 = vector.shape_cast %103 : vector<1x3x1x4x4xf32> to vector<3x4x4xf32>
    %cst_40 = arith.constant 1.000000e+00 : f32
    %105 = vector.broadcast %cst_40 : f32 to vector<3x4x4xf32>
    %106 = arith.mulf %104, %105 : vector<3x4x4xf32>
    %107 = math.exp %106 : vector<3x4x4xf32>
    %cst_41 = arith.constant 1.000000e+00 : f32
    %108 = vector.broadcast %cst_41 : f32 to vector<3x4x4xf32>
    %109 = arith.subf %107, %108 : vector<3x4x4xf32>
    %110 = arith.mulf %109, %109 : vector<3x4x4xf32>
    %111 = arith.mulf %110, %110 : vector<3x4x4xf32>
    %112 = arith.mulf %111, %111 : vector<3x4x4xf32>
    %113 = arith.mulf %110, %112 : vector<3x4x4xf32>
    %114 = tpu.reciprocal %107 : vector<3x4x4xf32> -> vector<3x4x4xf32>
    %cst_42 = arith.constant 1.000000e+00 : f32
    %115 = vector.broadcast %cst_42 : f32 to vector<3x4x4xf32>
    %116 = arith.subf %114, %115 : vector<3x4x4xf32>
    %117 = arith.mulf %116, %116 : vector<3x4x4xf32>
    %118 = arith.mulf %117, %117 : vector<3x4x4xf32>
    %119 = arith.mulf %118, %118 : vector<3x4x4xf32>
    %120 = arith.mulf %117, %119 : vector<3x4x4xf32>
    %121 = arith.addf %101, %113 : vector<3x4x4xf32>
    %122 = arith.addf %102, %120 : vector<3x4x4xf32>
    %c0_43 = arith.constant 0 : index
    %c0_44 = arith.constant 0 : index
    %c6 = arith.constant 6 : index
    %c0_45 = arith.constant 0 : index
    %c0_46 = arith.constant 0 : index
    %123 = vector.load %arg3[%c0_43, %c0_44, %c6, %c0_45, %c0_46] : memref<1x3x9x4x4xf32, #tpu.memory_space<vmem>>, vector<1x3x1x4x4xf32>
    %124 = vector.shape_cast %123 : vector<1x3x1x4x4xf32> to vector<3x4x4xf32>
    %cst_47 = arith.constant 1.000000e+00 : f32
    %125 = vector.broadcast %cst_47 : f32 to vector<3x4x4xf32>
    %126 = arith.mulf %124, %125 : vector<3x4x4xf32>
    %127 = math.exp %126 : vector<3x4x4xf32>
    %cst_48 = arith.constant 1.000000e+00 : f32
    %128 = vector.broadcast %cst_48 : f32 to vector<3x4x4xf32>
    %129 = arith.subf %127, %128 : vector<3x4x4xf32>
    %130 = arith.mulf %129, %129 : vector<3x4x4xf32>
    %131 = arith.mulf %130, %130 : vector<3x4x4xf32>
    %132 = arith.mulf %131, %131 : vector<3x4x4xf32>
    %133 = arith.mulf %130, %132 : vector<3x4x4xf32>
    %134 = tpu.reciprocal %127 : vector<3x4x4xf32> -> vector<3x4x4xf32>
    %cst_49 = arith.constant 1.000000e+00 : f32
    %135 = vector.broadcast %cst_49 : f32 to vector<3x4x4xf32>
    %136 = arith.subf %134, %135 : vector<3x4x4xf32>
    %137 = arith.mulf %136, %136 : vector<3x4x4xf32>
    %138 = arith.mulf %137, %137 : vector<3x4x4xf32>
    %139 = arith.mulf %138, %138 : vector<3x4x4xf32>
    %140 = arith.mulf %137, %139 : vector<3x4x4xf32>
    %141 = arith.addf %121, %133 : vector<3x4x4xf32>
    %142 = arith.addf %122, %140 : vector<3x4x4xf32>
    %c0_50 = arith.constant 0 : index
    %c0_51 = arith.constant 0 : index
    %c7 = arith.constant 7 : index
    %c0_52 = arith.constant 0 : index
    %c0_53 = arith.constant 0 : index
    %143 = vector.load %arg3[%c0_50, %c0_51, %c7, %c0_52, %c0_53] : memref<1x3x9x4x4xf32, #tpu.memory_space<vmem>>, vector<1x3x1x4x4xf32>
    %144 = vector.shape_cast %143 : vector<1x3x1x4x4xf32> to vector<3x4x4xf32>
    %cst_54 = arith.constant 1.000000e+00 : f32
    %145 = vector.broadcast %cst_54 : f32 to vector<3x4x4xf32>
    %146 = arith.mulf %144, %145 : vector<3x4x4xf32>
    %147 = math.exp %146 : vector<3x4x4xf32>
    %cst_55 = arith.constant 1.000000e+00 : f32
    %148 = vector.broadcast %cst_55 : f32 to vector<3x4x4xf32>
    %149 = arith.subf %147, %148 : vector<3x4x4xf32>
    %150 = arith.mulf %149, %149 : vector<3x4x4xf32>
    %151 = arith.mulf %150, %150 : vector<3x4x4xf32>
    %152 = arith.mulf %151, %151 : vector<3x4x4xf32>
    %153 = arith.mulf %150, %152 : vector<3x4x4xf32>
    %154 = tpu.reciprocal %147 : vector<3x4x4xf32> -> vector<3x4x4xf32>
    %cst_56 = arith.constant 1.000000e+00 : f32
    %155 = vector.broadcast %cst_56 : f32 to vector<3x4x4xf32>
    %156 = arith.subf %154, %155 : vector<3x4x4xf32>
    %157 = arith.mulf %156, %156 : vector<3x4x4xf32>
    %158 = arith.mulf %157, %157 : vector<3x4x4xf32>
    %159 = arith.mulf %158, %158 : vector<3x4x4xf32>
    %160 = arith.mulf %157, %159 : vector<3x4x4xf32>
    %161 = arith.addf %141, %153 : vector<3x4x4xf32>
    %162 = arith.addf %142, %160 : vector<3x4x4xf32>
    %c0_57 = arith.constant 0 : index
    %c0_58 = arith.constant 0 : index
    %c8 = arith.constant 8 : index
    %c0_59 = arith.constant 0 : index
    %c0_60 = arith.constant 0 : index
    %163 = vector.load %arg3[%c0_57, %c0_58, %c8, %c0_59, %c0_60] : memref<1x3x9x4x4xf32, #tpu.memory_space<vmem>>, vector<1x3x1x4x4xf32>
    %164 = vector.shape_cast %163 : vector<1x3x1x4x4xf32> to vector<3x4x4xf32>
    %cst_61 = arith.constant 1.000000e+00 : f32
    %165 = vector.broadcast %cst_61 : f32 to vector<3x4x4xf32>
    %166 = arith.mulf %164, %165 : vector<3x4x4xf32>
    %167 = math.exp %166 : vector<3x4x4xf32>
    %cst_62 = arith.constant 1.000000e+00 : f32
    %168 = vector.broadcast %cst_62 : f32 to vector<3x4x4xf32>
    %169 = arith.subf %167, %168 : vector<3x4x4xf32>
    %170 = arith.mulf %169, %169 : vector<3x4x4xf32>
    %171 = arith.mulf %170, %170 : vector<3x4x4xf32>
    %172 = arith.mulf %171, %171 : vector<3x4x4xf32>
    %173 = arith.mulf %170, %172 : vector<3x4x4xf32>
    %174 = tpu.reciprocal %167 : vector<3x4x4xf32> -> vector<3x4x4xf32>
    %cst_63 = arith.constant 1.000000e+00 : f32
    %175 = vector.broadcast %cst_63 : f32 to vector<3x4x4xf32>
    %176 = arith.subf %174, %175 : vector<3x4x4xf32>
    %177 = arith.mulf %176, %176 : vector<3x4x4xf32>
    %178 = arith.mulf %177, %177 : vector<3x4x4xf32>
    %179 = arith.mulf %178, %178 : vector<3x4x4xf32>
    %180 = arith.mulf %177, %179 : vector<3x4x4xf32>
    %181 = arith.addf %161, %173 : vector<3x4x4xf32>
    %182 = arith.addf %162, %180 : vector<3x4x4xf32>
    %183 = arith.mulf %181, %182 : vector<3x4x4xf32>
    %cst_64 = arith.constant 0.0123456791 : f32
    %184 = vector.broadcast %cst_64 : f32 to vector<3x4x4xf32>
    %185 = arith.mulf %183, %184 : vector<3x4x4xf32>
    %186 = vector.extract_strided_slice %185 {offsets = [0, 0, 0], sizes = [3, 2, 4], strides = [1, 1, 1]} : vector<3x4x4xf32> to vector<3x2x4xf32>
    %187 = vector.extract_strided_slice %185 {offsets = [0, 2, 0], sizes = [3, 2, 4], strides = [1, 1, 1]} : vector<3x4x4xf32> to vector<3x2x4xf32>
    %188 = arith.maximumf %186, %187 : vector<3x2x4xf32>
    %189 = vector.extract_strided_slice %188 {offsets = [0, 0, 0], sizes = [3, 2, 2], strides = [1, 1, 1]} : vector<3x2x4xf32> to vector<3x2x2xf32>
    %190 = vector.extract_strided_slice %188 {offsets = [0, 0, 2], sizes = [3, 2, 2], strides = [1, 1, 1]} : vector<3x2x4xf32> to vector<3x2x2xf32>
    %191 = arith.maximumf %189, %190 : vector<3x2x2xf32>
    %c0_65 = arith.constant 0 : index
    %c0_66 = arith.constant 0 : index
    %c0_67 = arith.constant 0 : index
    %192 = vector.load %arg6[%c0_65, %c0_66, %c0_67] : memref<3x2x2xf32, #tpu.memory_space<vmem>>, vector<3x2x2xf32>
    %193 = arith.maximumf %192, %191 : vector<3x2x2xf32>
    %c0_68 = arith.constant 0 : index
    %c0_69 = arith.constant 0 : index
    %c0_70 = arith.constant 0 : index
    %194 = vector.load %arg6[%c0_68, %c0_69, %c0_70] : memref<3x2x2xf32, #tpu.memory_space<vmem>>, vector<3x2x2xf32>
    tpu.vector_store %arg6[%c0_68, %c0_69, %c0_70], %193 {strides = array<i32>} : memref<3x2x2xf32, #tpu.memory_space<vmem>>, vector<3x2x2xf32>,
    %c0_i32_71 = arith.constant 0 : i32
    %195 = arith.cmpi eq, %arg1, %c0_i32_71 : i32
    %c0_i32_72 = arith.constant 0 : i32
    %196 = arith.cmpi eq, %arg2, %c0_i32_72 : i32
    %197 = arith.andi %195, %196 : i1
    %198 = arith.extui %197 : i1 to i32
    %c0_i32_73 = arith.constant 0 : i32
    %199 = arith.cmpi ne, %198, %c0_i32_73 : i32
    scf.if %199 {
      %c0_74 = arith.constant 0 : index
      %c0_75 = arith.constant 0 : index
      %c0_76 = arith.constant 0 : index
      %200 = vector.load %arg6[%c0_74, %c0_75, %c0_76] : memref<3x2x2xf32, #tpu.memory_space<vmem>>, vector<3x2x2xf32>
      %201 = vector.extract_strided_slice %200 {offsets = [0, 0, 0], sizes = [1, 2, 2], strides = [1, 1, 1]} : vector<3x2x2xf32> to vector<1x2x2xf32>
      %202 = vector.shape_cast %201 : vector<1x2x2xf32> to vector<2x2xf32>
      %203 = vector.extract_strided_slice %200 {offsets = [1, 0, 0], sizes = [1, 2, 2], strides = [1, 1, 1]} : vector<3x2x2xf32> to vector<1x2x2xf32>
      %204 = vector.shape_cast %203 : vector<1x2x2xf32> to vector<2x2xf32>
      %205 = arith.minimumf %202, %204 : vector<2x2xf32>
      %206 = vector.extract_strided_slice %200 {offsets = [2, 0, 0], sizes = [1, 2, 2], strides = [1, 1, 1]} : vector<3x2x2xf32> to vector<1x2x2xf32>
      %207 = vector.shape_cast %206 : vector<1x2x2xf32> to vector<2x2xf32>
      %208 = arith.minimumf %205, %207 : vector<2x2xf32>
      %c0_77 = arith.constant 0 : index
      %c0_78 = arith.constant 0 : index
      %c0_79 = arith.constant 0 : index
      %c0_80 = arith.constant 0 : index
      %209 = vector.load %arg4[%c0_77, %c0_78, %c0_79, %c0_80] : memref<1x4x2x2xf32, #tpu.memory_space<vmem>>, vector<1x4x2x2xf32>
      %210 = vector.shape_cast %208 : vector<2x2xf32> to vector<1x1x2x2xf32>
      %211 = vector.broadcast %210 : vector<1x1x2x2xf32> to vector<1x4x2x2xf32>
      %212 = arith.addf %209, %211 : vector<1x4x2x2xf32>
      %c0_81 = arith.constant 0 : index
      %c0_82 = arith.constant 0 : index
      %c0_83 = arith.constant 0 : index
      %c0_84 = arith.constant 0 : index
      %213 = vector.load %arg5[%c0_81, %c0_82, %c0_83, %c0_84] : memref<1x4x2x2xf32, #tpu.memory_space<vmem>>, vector<1x4x2x2xf32>
      tpu.vector_store %arg5[%c0_81, %c0_82, %c0_83, %c0_84], %212 {strides = array<i32>} : memref<1x4x2x2xf32, #tpu.memory_space<vmem>>, vector<1x4x2x2xf32>,
    } else {
    }
    return
  }
  func.func @transform_0(%arg0: i32, %arg1: i32, %arg2: i32) -> (i32, i32, i32, i32, i32) {
    %c0_i32 = arith.constant 0 : i32
    %c0_i32_0 = arith.constant 0 : i32
    %c0_i32_1 = arith.constant 0 : i32
    return %arg0, %c0_i32, %c0_i32_0, %arg1, %arg2 : i32, i32, i32, i32, i32
  }
  func.func @transform_1(%arg0: i32, %arg1: i32, %arg2: i32) -> (i32, i32, i32, i32) {
    %c0_i32 = arith.constant 0 : i32
    %c0_i32_0 = arith.constant 0 : i32
    %c0_i32_1 = arith.constant 0 : i32
    %c0_i32_2 = arith.constant 0 : i32
    return %arg0, %c0_i32, %c0_i32_0, %c0_i32_1 : i32, i32, i32, i32
  }
  func.func @transform_2(%arg0: i32, %arg1: i32, %arg2: i32) -> (i32, i32, i32, i32) {
    %c0_i32 = arith.constant 0 : i32
    %c0_i32_0 = arith.constant 0 : i32
    %c0_i32_1 = arith.constant 0 : i32
    %c0_i32_2 = arith.constant 0 : i32
    return %arg0, %c0_i32, %c0_i32_0, %c0_i32_1 : i32, i32, i32, i32
  }
}

</mosaic_0001>

<bundles_post_ra>
// kernel: evil_adaptive_avg_pool2d.1
= control target key start
LH: loop header
LB: loop body
LE: loop exit
PB: predicated region body
PF: predicated region fallthrough
CT: control target
= control target key end

     0   :  { %s1417_s9 = smov 0   ;;  %s1419_s10 = smov 0   ;;  %s2063_s0 = inlined_call_operand.vmem [shape: f32[2,3,9,4,4], index: 0, kind: input, shape index: {}]   ;;  %s2064_s1 = inlined_call_operand.vmem [shape: f32[2,4,2,2], index: 1, kind: input, shape index: {}]   ;;  %s2065_s2 = inlined_call_operand.vmem [shape: f32[2,4,2,2], index: 2, kind: output, shape index: {}]  }
   0x1   :  { %s1421_s11 = smov 0  }
   0x2 LB: > { %s31_s12 = sadd.s32 1, %s1394_s10  ;;  %p1153_p0 = scmp.ge.s32.totalorder %s1398_s11, 1  ;;  %s1398_s11 = sphi %s1421_s11, %s12_s11   ;;  %s1394_s10 = sphi %s1419_s10, %s2141_s10   ;;  %s1390_s9 = sphi %s1417_s9, %s2140_s9  }
   0x3   : > { %p33_p1 = scmp.ge.s32.totalorder %s31_s12, 2  ;;  %p151_p2 = scmp.lt.s32.totalorder %s1398_s11, 3 }
   0x5   : > { %s2143_s12 = smov (%p33_p1, %s31_s12), 0  ;;  %p152_p3 = pnand %p1153_p0, %p151_p2 }
   0x6   : > { %p184_p4 = scmp.lt.s32.totalorder (!%p152_p3), %s1390_s9, 1  ;;  %s1400_s17 = smov (!%p152_p3), 126  }
   0x7   : > { %155 = sbr.rel (%p152_p3) target bundleno = 363 (0x16b), region = 28 }
   0xc   : > { %s2145_s9 = smov (!%p184_p4, %s1390_s9), 1 }
   0xd   : > { %s1241_s13 = smul.u32 108, %s2145_s9  ;;  %s1239_s18 = sshll.u32 %s2145_s9, 3 }
   0xe   : > { %s199_s21 = scalar_lea.vmem %s2064_s1, %s1239_s18  ;;  %s204_s24 = scalar_lea.vmem %s2065_s2, %s1239_s18 }
   0xf   : > { %s1441_s16 = scalar_lea.vmem %s2063_s0, %s1241_s13 }
  0x10   : > { %v215_v0 = vld [vmem:[%s1441_s16] sm:$0xf]  ;;  %v1165_v1 = vld [vmem:[%s1441_s16 + $0x4] sm:$0xf]  ;;  %v1174_v2 = vld [vmem:[%s1441_s16 + $0x8] sm:$0xf] }
  0x11   : > { %v218_v3 = vmul.f32 1.442695, %v215_v0  ;;  %v300_v4 = vmul.f32 1.442695, %v1165_v1  ;;  %v388_v5 = vmul.f32 1.442695, %v1174_v2 }
  0x12   : > { %v1183_v6 = vld [vmem:[%s1441_s16 + $0xc] sm:$0xf]  ;;  %v1192_v8 = vld [vmem:[%s1441_s16 + $0x10] sm:$0xf]  ;;  %v1201_v9 = vld [vmem:[%s1441_s16 + $0x14] sm:$0xf] }
  0x13   : > { %1268 = vpow2.f32 %v218_v3  ;;  %v476_v7 = vmul.f32 1.442695, %v1183_v6  ;;  %v564_v10 = vmul.f32 1.442695, %v1192_v8  ;;  %v652_v14 = vmul.f32 1.442695, %v1201_v9 }
  0x14   : > { %1270 = vpow2.f32 %v300_v4  ;;  %v1210_v15 = vld [vmem:[%s1441_s16 + $0x18] sm:$0xf]  ;;  %v216_v55 = vld [vmem:[%s1441_s16 + $0x24] sm:$0xf] }
  0x15   : > { %1272 = vpow2.f32 %v388_v5  ;;  %v1462_v26 = vmul.f32 1.442695, %v1210_v15 }
  0x16   : > { %1274 = vpow2.f32 %v476_v7 }
  0x19   : > { %v1269_v11 = vpop.eup %1268 }
  0x1a   : > { %v1449_v12 = vpop.eup %1270  ;;  %v1159_v13 = vadd.f32 -1.0, %v1269_v11  ;;  %1276 = vrcp.f32 %v1269_v11  ;;  %v248_v17 = vand.u32 2147483647, %v1269_v11  ;;  %v250_v18 = vand.u32 2147483648, %v1269_v11 }
  0x1b   : > { %v1452_v16 = vpop.eup %1272  ;;  %v1168_v19 = vadd.f32 -1.0, %v1449_v12  ;;  %1278 = vrcp.f32 %v1449_v12  ;;  %v330_v21 = vand.u32 2147483647, %v1449_v12  ;;  %v332_v22 = vand.u32 2147483648, %v1449_v12 }
  0x1c   : > { %v227_v20 = vmul.f32 %v1159_v13, %v1159_v13  ;;  %1280 = vpow2.f32 %v564_v10  ;;  %v1458_v23 = vpop.eup %1274  ;;  %v1177_v25 = vadd.f32 -1.0, %v1452_v16  ;;  %vm244_vm0 = vweird.f32 %v1269_v11 }
  0x1d   : > { %v309_v24 = vmul.f32 %v1168_v19, %v1168_v19  ;;  %1282 = vrcp.f32 %v1452_v16  ;;  %vm326_vm1 = vweird.f32 %v1449_v12  ;;  %vm1465_vm2 = vcmp.eq.f32.partialorder %v248_v17, 8.507059e+37 }
  0x1e   : > { %v230_v27 = vmul.f32 %v227_v20, %v227_v20  ;;  %1284 = vpow2.f32 %v652_v14  ;;  %v251_v29 = vor.u32 1.1754944e-38, %v250_v18  ;;  %v333_v31 = vor.u32 1.1754944e-38, %v332_v22 }
  0x1f   : > { %v312_v30 = vmul.f32 %v309_v24, %v309_v24  ;;  %v397_v32 = vmul.f32 %v1177_v25, %v1177_v25  ;;  %vm1469_vm3 = vcmp.eq.f32.partialorder %v330_v21, 8.507059e+37  ;;  %v418_v36 = vand.u32 2147483647, %v1452_v16 }
  0x20   : > { %v1277_v33 = vpop.eup %1276  ;;  %v233_v34 = vmul.f32 %v230_v27, %v230_v27  ;;  %v1186_v37 = vadd.f32 -1.0, %v1458_v23  ;;  %1286 = vrcp.f32 %v1458_v23  ;;  %v420_v42 = vand.u32 2147483648, %v1452_v16 }
  0x21   : > { %v1279_v38 = vpop.eup %1278  ;;  %v240_v39 = vmul.f32 %v1277_v33, %v1269_v11  ;;  %v315_v40 = vmul.f32 %v312_v30, %v312_v30  ;;  %v400_v41 = vmul.f32 %v397_v32, %v397_v32  ;;  %vm245_vm4 = vweird.f32 %v1277_v33 }
  0x22   : > { %v1477_v43 = vpop.eup %1280  ;;  %v322_v44 = vmul.f32 %v1279_v38, %v1449_v12  ;;  %vm414_vm5 = vweird.f32 %v1452_v16  ;;  %vm502_vm6 = vweird.f32 %v1458_v23  ;;  %v236_v46 = vmul.f32 %v233_v34, %v227_v20  ;;  %vm1491_vm10 = vmor %vm244_vm0, %vm245_vm4 }
  0x23   : > { %v1283_v45 = vpop.eup %1282  ;;  %v241_v47 = vsub.f32 1.0, %v240_v39  ;;  %v318_v48 = vmul.f32 %v315_v40, %v309_v24  ;;  %v403_v49 = vmul.f32 %v400_v41, %v400_v41  ;;  %vm327_vm7 = vweird.f32 %v1279_v38 }
  0x24   : > { %v1482_v50 = vpop.eup %1284  ;;  %v323_v51 = vsub.f32 1.0, %v322_v44  ;;  %v410_v52 = vmul.f32 %v1283_v45, %v1452_v16  ;;  %v485_v53 = vmul.f32 %v1186_v37, %v1186_v37  ;;  %vm415_vm8 = vweird.f32 %v1283_v45  ;;  %vm1498_vm11 = vmor %vm326_vm1, %vm327_vm7  ;;  %v1219_v37 = vld [vmem:[%s1441_s16 + $0x1c] sm:$0xf] }
  0x25   : > { %v242_v54 = vmul.f32 %v1277_v33, %v241_v47  ;;  %vm1485_vm9 = vcmp.eq.f32.partialorder %v418_v36, 8.507059e+37  ;;  %v421_v56 = vor.u32 1.1754944e-38, %v420_v42  ;;  %v506_v62 = vand.u32 2147483647, %v1458_v23  ;;  %vm1509_vm13 = vmor %vm414_vm5, %vm415_vm8 }
  0x26   : > { %v1287_v57 = vpop.eup %1286  ;;  %v324_v59 = vmul.f32 %v1279_v38, %v323_v51  ;;  %v411_v60 = vsub.f32 1.0, %v410_v52  ;;  %v488_v61 = vmul.f32 %v485_v53, %v485_v53  ;;  %v378_v1 = vadd.f32 %v318_v48, %v236_v46 }
  0x27   : > { %v243_v63 = vadd.f32 %v1277_v33, %v242_v54  ;;  %v406_v2 = vmul.f32 %v403_v49, %v397_v32  ;;  %v498_v3 = vmul.f32 %v1287_v57, %v1458_v23  ;;  %vm503_vm12 = vweird.f32 %v1287_v57 }
  0x28   : > { %v325_v4 = vadd.f32 %v1279_v38, %v324_v59  ;;  %v412_v5 = vmul.f32 %v1283_v45, %v411_v60  ;;  %v508_v6 = vand.u32 2147483648, %v1458_v23  ;;  %v491_v9 = vmul.f32 %v488_v61, %v488_v61  ;;  %vm1529_vm15 = vmor %vm502_vm6, %vm503_vm12 }
  0x29   : > { %v247_v7 = vsel %vm1491_vm10, %v1277_v33, %v243_v63  ;;  %v499_v10 = vsub.f32 1.0, %v498_v3  ;;  %v1195_v11 = vadd.f32 -1.0, %v1477_v43  ;;  %vm1518_vm14 = vcmp.eq.f32.partialorder %v506_v62, 8.507059e+37 }
  0x2a   : > { %v252_v12 = vsel %vm1465_vm2, %v251_v29, %v247_v7  ;;  %v329_v13 = vsel %vm1498_vm11, %v1279_v38, %v325_v4  ;;  %v413_v14 = vadd.f32 %v1283_v45, %v412_v5  ;;  %v509_v24 = vor.u32 1.1754944e-38, %v508_v6 }
  0x2b   : > { %v1162_v16 = vadd.f32 -1.0, %v252_v12  ;;  %v334_v17 = vsel %vm1469_vm3, %v333_v31, %v329_v13  ;;  %v500_v18 = vmul.f32 %v1287_v57, %v499_v10  ;;  %v573_v19 = vmul.f32 %v1195_v11, %v1195_v11 }
  0x2c   : > { %v1171_v20 = vadd.f32 -1.0, %v334_v17  ;;  %v417_v21 = vsel %vm1509_vm13, %v1283_v45, %v413_v14  ;;  %1288 = vrcp.f32 %v1477_v43  ;;  %v466_v35 = vadd.f32 %v406_v2, %v378_v1 }
  0x2d   : > { %v284_v25 = vmul.f32 %v1162_v16, %v1162_v16  ;;  %v422_v27 = vsel %vm1485_vm9, %v421_v56, %v417_v21  ;;  %v501_v28 = vadd.f32 %v1287_v57, %v500_v18  ;;  %v576_v29 = vmul.f32 %v573_v19, %v573_v19  ;;  %v1228_v16 = vld [vmem:[%s1441_s16 + $0x20] sm:$0xf] }
  0x2e   : > { %v366_v30 = vmul.f32 %v1171_v20, %v1171_v20  ;;  %v1180_v31 = vadd.f32 -1.0, %v422_v27  ;;  %1290 = vpow2.f32 %v1462_v26  ;;  %v494_v39 = vmul.f32 %v491_v9, %v485_v53 }
  0x2f   : > { %v287_v32 = vmul.f32 %v284_v25, %v284_v25  ;;  %v505_v23 = vsel %vm1529_vm15, %v1287_v57, %v501_v28  ;;  %v579_v41 = vmul.f32 %v576_v29, %v576_v29  ;;  %v1204_v46 = vadd.f32 -1.0, %v1482_v50 }
  0x30   : > { %v369_v33 = vmul.f32 %v366_v30, %v366_v30  ;;  %v454_v34 = vmul.f32 %v1180_v31, %v1180_v31  ;;  %v510_v36 = vsel %vm1518_vm14, %v509_v24, %v505_v23  ;;  %1292 = vrcp.f32 %v1482_v50 }
  0x31   : > { %v290_v38 = vmul.f32 %v287_v32, %v287_v32  ;;  %v1189_v40 = vadd.f32 -1.0, %v510_v36  ;;  %v596_v48 = vand.u32 2147483648, %v1477_v43  ;;  %v828_v49 = vmul.f32 1.442695, %v1219_v37 }
  0x32   : > { %v1289_v42 = vpop.eup %1288  ;;  %v372_v44 = vmul.f32 %v369_v33, %v369_v33  ;;  %v457_v45 = vmul.f32 %v454_v34, %v454_v34  ;;  %v661_v53 = vmul.f32 %v1204_v46, %v1204_v46  ;;  %vm590_vm0 = vweird.f32 %v1477_v43 }
  0x33   : > { %v542_v26 = vmul.f32 %v1189_v40, %v1189_v40  ;;  %v586_v47 = vmul.f32 %v1289_v42, %v1477_v43  ;;  %v293_v51 = vmul.f32 %v290_v38, %v284_v25  ;;  %vm591_vm1 = vweird.f32 %v1289_v42  ;;  %v1166_v40 = vld [vmem:[%s1441_s16 + $0x28] sm:$0xf] }
  0x34   : > { %v375_v52 = vmul.f32 %v372_v44, %v366_v30  ;;  %v460_v54 = vmul.f32 %v457_v45, %v457_v45  ;;  %v1547_v56 = vpop.eup %1290  ;;  %v594_v58 = vand.u32 2147483647, %v1477_v43  ;;  %v554_v60 = vadd.f32 %v494_v39, %v466_v35  ;;  %vm1552_vm2 = vmor %vm590_vm0, %vm591_vm1 }
  0x35   : > { %v587_v57 = vsub.f32 1.0, %v586_v47  ;;  %v545_v59 = vmul.f32 %v542_v26, %v542_v26  ;;  %v582_v61 = vmul.f32 %v579_v41, %v573_v19  ;;  %v664_v62 = vmul.f32 %v661_v53, %v661_v53 }
  0x36   : > { %v597_v0 = vor.u32 1.1754944e-38, %v596_v48  ;;  %v1213_v1 = vadd.f32 -1.0, %v1547_v56  ;;  %v220_v2 = vmul.f32 1.442695, %v216_v55  ;;  %v1293_v3 = vpop.eup %1292  ;;  %v381_v4 = vadd.f32 %v375_v52, %v293_v51 }
  0x37   : > { %v588_v63 = vmul.f32 %v1289_v42, %v587_v57  ;;  %v463_v5 = vmul.f32 %v460_v54, %v454_v34  ;;  %v682_v7 = vand.u32 2147483647, %v1482_v50  ;;  %1294 = vrcp.f32 %v1547_v56 }
  0x38   : > { %vm595_vm3 = vcmp.eq.f32.partialorder %v594_v58, 8.507059e+37  ;;  %v674_v8 = vmul.f32 %v1293_v3, %v1482_v50  ;;  %v684_v9 = vand.u32 2147483648, %v1482_v50  ;;  %v548_v10 = vmul.f32 %v545_v59, %v545_v59 }
  0x39   : > { %v589_v43 = vadd.f32 %v1289_v42, %v588_v63  ;;  %v642_v11 = vadd.f32 %v582_v61, %v554_v60  ;;  %v667_v12 = vmul.f32 %v664_v62, %v664_v62  ;;  %v749_v13 = vmul.f32 %v1213_v1, %v1213_v1  ;;  %v1184_v61 = vld [vmem:[%s1441_s16 + $0x30] sm:$0xf] }
  0x3a   : > { %v675_v15 = vsub.f32 1.0, %v674_v8  ;;  %vm678_vm4 = vweird.f32 %v1482_v50  ;;  %vm679_vm5 = vweird.f32 %v1293_v3  ;;  %v469_v17 = vadd.f32 %v463_v5, %v381_v4 }
  0x3b   : > { %v593_v14 = vsel %vm1552_vm2, %v1289_v42, %v589_v43  ;;  %vm1564_vm6 = vcmp.eq.f32.partialorder %v682_v7, 8.507059e+37  ;;  %v752_v20 = vmul.f32 %v749_v13, %v749_v13  ;;  %v685_v24 = vor.u32 1.1754944e-38, %v684_v9  ;;  %vm1568_vm7 = vmor %vm678_vm4, %vm679_vm5 }
  0x3c   : > { %v598_v18 = vsel %vm595_vm3, %v597_v0, %v593_v14  ;;  %v676_v22 = vmul.f32 %v1293_v3, %v675_v15  ;;  %1296 = vpow2.f32 %v828_v49  ;;  %v551_v27 = vmul.f32 %v548_v10, %v542_v26  ;;  %v1175_v26 = vld [vmem:[%s1441_s16 + $0x2c] sm:$0xf] }
  0x3d   : > { %v1198_v21 = vadd.f32 -1.0, %v598_v18  ;;  %v1295_v25 = vpop.eup %1294  ;;  %v670_v28 = vmul.f32 %v667_v12, %v661_v53  ;;  %v916_v50 = vmul.f32 1.442695, %v1228_v16  ;;  %1298 = vpow2.f32 %v220_v2 }
  0x3e   : > { %v677_v31 = vadd.f32 %v1293_v3, %v676_v22  ;;  %v762_v32 = vmul.f32 %v1295_v25, %v1547_v56  ;;  %vm766_vm8 = vweird.f32 %v1547_v56  ;;  %v755_v23 = vmul.f32 %v752_v20, %v752_v20 }
  0x3f   : > { %v630_v30 = vmul.f32 %v1198_v21, %v1198_v21  ;;  %v770_v33 = vand.u32 2147483647, %v1547_v56  ;;  %v772_v34 = vand.u32 2147483648, %v1547_v56  ;;  %1300 = vpow2.f32 %v916_v50 }
  0x40   : > { %v681_v36 = vsel %vm1568_vm7, %v1293_v3, %v677_v31  ;;  %v763_v37 = vsub.f32 1.0, %v762_v32  ;;  %vm767_vm9 = vweird.f32 %v1295_v25  ;;  %v557_v38 = vadd.f32 %v551_v27, %v469_v17 }
  0x41   : > { %v633_v35 = vmul.f32 %v630_v30, %v630_v30  ;;  %v686_v39 = vsel %vm1564_vm6, %v685_v24, %v681_v36  ;;  %v730_v45 = vadd.f32 %v670_v28, %v642_v11  ;;  %vm1588_vm10 = vmor %vm766_vm8, %vm767_vm9  ;;  %vm1592_vm11 = vcmp.eq.f32.partialorder %v770_v33, 8.507059e+37 }
  0x42   : > { %v1581_v41 = vpop.eup %1296  ;;  %v1207_v44 = vadd.f32 -1.0, %v686_v39  ;;  %v764_v46 = vmul.f32 %v1295_v25, %v763_v37  ;;  %v773_v51 = vor.u32 1.1754944e-38, %v772_v34  ;;  %v758_v53 = vmul.f32 %v755_v23, %v749_v13 }
  0x43   : > { %v636_v42 = vmul.f32 %v633_v35, %v633_v35  ;;  %v1584_v47 = vpop.eup %1298  ;;  %v1222_v52 = vadd.f32 -1.0, %v1581_v41  ;;  %1302 = vrcp.f32 %v1581_v41  ;;  %v302_v57 = vmul.f32 1.442695, %v1166_v40 }
  0x44   : > { %v718_v54 = vmul.f32 %v1207_v44, %v1207_v44  ;;  %v765_v55 = vadd.f32 %v1295_v25, %v764_v46  ;;  %v858_v59 = vand.u32 2147483647, %v1581_v41  ;;  %1304 = vrcp.f32 %v1584_v47 }
  0x45   : > { %v1598_v58 = vpop.eup %1300  ;;  %v837_v56 = vmul.f32 %v1222_v52, %v1222_v52  ;;  %v390_v60 = vmul.f32 1.442695, %v1175_v26  ;;  %v639_v62 = vmul.f32 %v636_v42, %v630_v30  ;;  %v860_v1 = vand.u32 2147483648, %v1581_v41 }
  0x46   : > { %v721_v63 = vmul.f32 %v718_v54, %v718_v54  ;;  %v769_v0 = vsel %vm1588_vm10, %v1295_v25, %v765_v55  ;;  %v1231_v4 = vadd.f32 -1.0, %v1598_v58  ;;  %1306 = vrcp.f32 %v1598_v58 }
  0x47   : > { %v774_v2 = vsel %vm1592_vm11, %v773_v51, %v769_v0  ;;  %v840_v3 = vmul.f32 %v837_v56, %v837_v56  ;;  %v1610_v6 = vadd.f32 %v758_v53, %v730_v45  ;;  %1308 = vpow2.f32 %v302_v57 }
  0x48   : > { %v1216_v5 = vadd.f32 -1.0, %v774_v2  ;;  %v1612_v7 = vmul.f32 1.442695, %v1184_v61  ;;  %v724_v8 = vmul.f32 %v721_v63, %v721_v63  ;;  %vm854_vm12 = vweird.f32 %v1581_v41 }
  0x49   : > { %v1303_v43 = vpop.eup %1302  ;;  %v1160_v9 = vadd.f32 -1.0, %v1584_v47  ;;  %1310 = vpow2.f32 %v390_v60  ;;  %v843_v11 = vmul.f32 %v840_v3, %v840_v3  ;;  %v925_v13 = vmul.f32 %v1231_v4, %v1231_v4 }
  0x4a   : > { %v806_v10 = vmul.f32 %v1216_v5, %v1216_v5  ;;  %v850_v12 = vmul.f32 %v1303_v43, %v1581_v41  ;;  %v1305_v14 = vpop.eup %1304  ;;  %v645_v15 = vadd.f32 %v639_v62, %v557_v38  ;;  %vm1617_vm13 = vcmp.eq.f32.partialorder %v858_v59, 8.507059e+37  ;;  %v1193_v5 = vld [vmem:[%s1441_s16 + $0x34] sm:$0xf] }
  0x4b   : > { %v861_v17 = vor.u32 1.1754944e-38, %v860_v1  ;;  %v946_v18 = vand.u32 2147483647, %v1598_v58  ;;  %vm855_vm14 = vweird.f32 %v1303_v43  ;;  %vm942_vm15 = vweird.f32 %v1598_v58 }
  0x4c   : > { %v851_v19 = vsub.f32 1.0, %v850_v12  ;;  %v948_v20 = vand.u32 2147483648, %v1598_v58  ;;  %v1307_v21 = vpop.eup %1306  ;;  %v727_v22 = vmul.f32 %v724_v8, %v718_v54  ;;  %v809_v24 = vmul.f32 %v806_v10, %v806_v10  ;;  %vm1634_vm0 = vmor %vm854_vm12, %vm855_vm14 }
  0x4d   : > { %v1624_v25 = vmul.f32 %v1160_v9, %v1160_v9  ;;  %v254_v27 = vmul.f32 %v1305_v14, %v1584_v47  ;;  %v1627_v28 = vpop.eup %1308  ;;  %v846_v29 = vmul.f32 %v843_v11, %v837_v56  ;;  %v928_v30 = vmul.f32 %v925_v13, %v925_v13 }
  0x4e   : > { %v852_v50 = vmul.f32 %v1303_v43, %v851_v19  ;;  %v938_v31 = vmul.f32 %v1307_v21, %v1598_v58  ;;  %vm1638_vm1 = vcmp.eq.f32.partialorder %v946_v18, 8.507059e+37  ;;  %vm258_vm2 = vweird.f32 %v1584_v47 }
  0x4f   : > { %v1630_v32 = vpop.eup %1310  ;;  %v255_v34 = vsub.f32 1.0, %v254_v27  ;;  %vm259_vm3 = vweird.f32 %v1305_v14  ;;  %vm943_vm4 = vweird.f32 %v1307_v21  ;;  %v262_v37 = vand.u32 2147483647, %v1584_v47 }
  0x50   : > { %v853_v35 = vadd.f32 %v1303_v43, %v852_v50  ;;  %v939_v36 = vsub.f32 1.0, %v938_v31  ;;  %v812_v38 = vmul.f32 %v809_v24, %v809_v24  ;;  %v949_v39 = vor.u32 1.1754944e-38, %v948_v20  ;;  %vm1649_vm5 = vmor %vm258_vm2, %vm259_vm3 }
  0x51   : > { %v256_v40 = vmul.f32 %v1305_v14, %v255_v34  ;;  %v264_v41 = vand.u32 2147483648, %v1584_v47  ;;  %v231_v45 = vmul.f32 %v1624_v25, %v1624_v25  ;;  %vm263_vm6 = vcmp.eq.f32.partialorder %v262_v37, 8.507059e+37  ;;  %vm1657_vm7 = vmor %vm942_vm15, %vm943_vm4 }
  0x52   : > { %v857_v42 = vsel %vm1634_vm0, %v1303_v43, %v853_v35  ;;  %v940_v44 = vmul.f32 %v1307_v21, %v939_v36  ;;  %v1169_v51 = vadd.f32 -1.0, %v1627_v28  ;;  %v931_v54 = vmul.f32 %v928_v30, %v928_v30  ;;  %v1202_v36 = vld [vmem:[%s1441_s16 + $0x38] sm:$0xf] }
  0x53   : > { %v862_v26 = vsel %vm1617_vm13, %v861_v17, %v857_v42  ;;  %v257_v47 = vadd.f32 %v1305_v14, %v256_v40  ;;  %v265_v49 = vor.u32 1.1754944e-38, %v264_v41  ;;  %1312 = vrcp.f32 %v1627_v28 }
  0x54   : > { %v1225_v52 = vadd.f32 -1.0, %v862_v26  ;;  %v941_v53 = vadd.f32 %v1307_v21, %v940_v44  ;;  %v733_v55 = vadd.f32 %v727_v22, %v645_v15  ;;  %v815_v57 = vmul.f32 %v812_v38, %v806_v10 }
  0x55   : > { %v261_v56 = vsel %vm1649_vm5, %v1305_v14, %v257_v47  ;;  %1314 = vpow2.f32 %v1612_v7  ;;  %v906_v61 = vadd.f32 %v846_v29, %v1610_v6  ;;  %v310_v63 = vmul.f32 %v1169_v51, %v1169_v51 }
  0x56   : > { %v894_v58 = vmul.f32 %v1225_v52, %v1225_v52  ;;  %v945_v59 = vsel %vm1657_vm7, %v1307_v21, %v941_v53  ;;  %v266_v60 = vsel %vm263_vm6, %v265_v49, %v261_v56  ;;  %v1178_v0 = vadd.f32 -1.0, %v1630_v32  ;;  %v1211_v52 = vld [vmem:[%s1441_s16 + $0x3c] sm:$0xf] }
  0x57   : > { %v950_v62 = vsel %vm1638_vm1, %v949_v39, %v945_v59  ;;  %v934_v2 = vmul.f32 %v931_v54, %v925_v13  ;;  %v234_v4 = vmul.f32 %v231_v45, %v231_v45  ;;  %v821_v43 = vadd.f32 %v815_v57, %v733_v55 }
  0x58   : > { %v897_v1 = vmul.f32 %v894_v58, %v894_v58  ;;  %v1234_v3 = vadd.f32 -1.0, %v950_v62  ;;  %v1163_v8 = vadd.f32 -1.0, %v266_v60  ;;  %1316 = vrcp.f32 %v1630_v32 }
  0x59   : > { %v1313_v9 = vpop.eup %1312  ;;  %v344_v6 = vand.u32 2147483647, %v1627_v28  ;;  %v346_v11 = vand.u32 2147483648, %v1627_v28  ;;  %v313_v12 = vmul.f32 %v310_v63, %v310_v63  ;;  %v1677_v15 = vmul.f32 %v1178_v0, %v1178_v0 }
  0x5a   : > { %v900_v10 = vmul.f32 %v897_v1, %v897_v1  ;;  %v982_v7 = vmul.f32 %v1234_v3, %v1234_v3  ;;  %v336_v14 = vmul.f32 %v1313_v9, %v1627_v28  ;;  %v566_v13 = vmul.f32 1.442695, %v1193_v5 }
  0x5b   : > { %v1679_v16 = vpop.eup %1314  ;;  %v994_v19 = vadd.f32 %v934_v2, %v906_v61  ;;  %v1682_v20 = vmul.f32 %v234_v4, %v1624_v25  ;;  %v1684_v21 = vmul.f32 %v1163_v8, %v1163_v8  ;;  %vm340_vm8 = vweird.f32 %v1627_v28 }
  0x5c   : > { %v903_v17 = vmul.f32 %v900_v10, %v894_v58  ;;  %v985_v18 = vmul.f32 %v982_v7, %v982_v7  ;;  %v337_v22 = vsub.f32 1.0, %v336_v14  ;;  %vm341_vm9 = vweird.f32 %v1313_v9 }
  0x5d   : > { %vm1687_vm10 = vcmp.eq.f32.partialorder %v344_v6, 8.507059e+37  ;;  %v347_v50 = vor.u32 1.1754944e-38, %v346_v11  ;;  %v316_v31 = vmul.f32 %v313_v12, %v313_v12  ;;  %v401_v25 = vmul.f32 %v1677_v15, %v1677_v15  ;;  %vm1694_vm11 = vmor %vm340_vm8, %vm341_vm9 }
  0x5e   : > { %v909_v24 = vadd.f32 %v903_v17, %v821_v43  ;;  %v988_v27 = vmul.f32 %v985_v18, %v985_v18  ;;  %v1317_v30 = vpop.eup %1316  ;;  %v338_v23 = vmul.f32 %v1313_v9, %v337_v22  ;;  %1318 = vrcp.f32 %v1679_v16 }
  0x5f   : > { %v424_v34 = vmul.f32 %v1317_v30, %v1630_v32  ;;  %vm428_vm12 = vweird.f32 %v1630_v32  ;;  %v432_v35 = vand.u32 2147483647, %v1630_v32  ;;  %v288_v37 = vmul.f32 %v1684_v21, %v1684_v21 }
  0x60   : > { %v991_v33 = vmul.f32 %v988_v27, %v982_v7  ;;  %v339_v38 = vadd.f32 %v1313_v9, %v338_v23  ;;  %v434_v39 = vand.u32 2147483648, %v1630_v32  ;;  %v1187_v40 = vadd.f32 -1.0, %v1679_v16  ;;  %v1229_v23 = vld [vmem:[%s1441_s16 + $0x44] sm:$0xf] }
  0x61   : > { %v425_v42 = vsub.f32 1.0, %v424_v34  ;;  %vm429_vm13 = vweird.f32 %v1317_v30  ;;  %1320 = vpow2.f32 %v566_v13  ;;  %v319_v44 = vmul.f32 %v316_v31, %v310_v63  ;;  %v1220_v31 = vld [vmem:[%s1441_s16 + $0x40] sm:$0xf] }
  0x62   : > { %v997_v41 = vadd.f32 %v991_v33, %v909_v24  ;;  %v343_v45 = vsel %vm1694_vm11, %v1313_v9, %v339_v38  ;;  %v404_v46 = vmul.f32 %v401_v25, %v401_v25  ;;  %v654_v26 = vmul.f32 1.442695, %v1202_v36  ;;  %vm1717_vm15 = vmor %vm428_vm12, %vm429_vm13 }
  0x63   : > { %v348_v47 = vsel %vm1687_vm10, %v347_v50, %v343_v45  ;;  %v426_v49 = vmul.f32 %v1317_v30, %v425_v42  ;;  %vm1710_vm14 = vcmp.eq.f32.partialorder %v432_v35, 8.507059e+37  ;;  %v435_v57 = vor.u32 1.1754944e-38, %v434_v39 }
  0x64   : > { %v1000_v48 = vmul.f32 %v997_v41, %v994_v19  ;;  %v1319_v54 = vpop.eup %1318  ;;  %v1172_v53 = vadd.f32 -1.0, %v348_v47  ;;  %v486_v56 = vmul.f32 %v1187_v40, %v1187_v40  ;;  %1322 = vpow2.f32 %v654_v26 }
  0x65   : > { %v427_v59 = vadd.f32 %v1317_v30, %v426_v49  ;;  %v512_v60 = vmul.f32 %v1319_v54, %v1679_v16  ;;  %vm516_vm0 = vweird.f32 %v1679_v16  ;;  %v520_v62 = vand.u32 2147483647, %v1679_v16 }
  0x66   : > { %v1003_v58 = vmul.f32 0.012345679, %v1000_v48  ;;  %v367_v61 = vmul.f32 %v1172_v53, %v1172_v53  ;;  %v522_v63 = vand.u32 2147483648, %v1679_v16  ;;  %v742_v0 = vmul.f32 1.442695, %v1211_v52 }
  0x67   : > { %v1725_v32 = vpop.eup %1320  ;;  %v431_v2 = vsel %vm1717_vm15, %v1317_v30, %v427_v59  ;;  %v513_v3 = vsub.f32 1.0, %v512_v60  ;;  %vm517_vm1 = vweird.f32 %v1319_v54  ;;  %v489_v43 = vmul.f32 %v486_v56, %v486_v56 }
  0x68   : > { %v1009_v1 = vrot.slane %v1003_v58, 2  ;;  %v370_v4 = vmul.f32 %v367_v61, %v367_v61  ;;  %v436_v5 = vsel %vm1710_vm14, %v435_v57, %v431_v2  ;;  %v1196_v8 = vadd.f32 -1.0, %v1725_v32  ;;  %vm1740_vm2 = vmor %vm516_vm0, %vm517_vm1 }
  0x69   : > { %v1181_v10 = vadd.f32 -1.0, %v436_v5  ;;  %v514_v7 = vmul.f32 %v1319_v54, %v513_v3  ;;  %1324 = vrcp.f32 %v1725_v32  ;;  %v291_v11 = vmul.f32 %v288_v37, %v288_v37  ;;  %v217_v3 = vld [vmem:[%s1441_s16 + $0x48] sm:$0xf] }
  0x6a   : > { %v1732_v9 = vmax.f32 %v1003_v58, %v1009_v1  ;;  %v1735_v6 = vpop.eup %1322  ;;  %v379_v12 = vadd.f32 %v319_v44, %v1682_v20  ;;  %vm521_vm3 = vcmp.eq.f32.partialorder %v520_v62, 8.507059e+37  ;;  %v523_v13 = vor.u32 1.1754944e-38, %v522_v63 }
  0x6b   : > { %v373_v17 = vmul.f32 %v370_v4, %v370_v4  ;;  %v455_v18 = vmul.f32 %v1181_v10, %v1181_v10  ;;  %v515_v19 = vadd.f32 %v1319_v54, %v514_v7  ;;  %1326 = vpow2.f32 %v742_v0 }
  0x6c   : > { %1021 = vrot.lane.b32.xlu0 %v1732_v9, %s1400_s17  ;;  %v407_v20 = vmul.f32 %v404_v46, %v1677_v15  ;;  %v492_v22 = vmul.f32 %v489_v43, %v489_v43  ;;  %v574_v16 = vmul.f32 %v1196_v8, %v1196_v8  ;;  %1328 = vrcp.f32 %v1735_v6 }
  0x6d   : > { %v519_v24 = vsel %vm1740_vm2, %v1319_v54, %v515_v19  ;;  %v608_v27 = vand.u32 2147483647, %v1725_v32  ;;  %v458_v29 = vmul.f32 %v455_v18, %v455_v18  ;;  %v1205_v30 = vadd.f32 -1.0, %v1735_v6 }
  0x6e   : > { %v524_v50 = vsel %vm521_vm3, %v523_v13, %v519_v24  ;;  %v294_v33 = vmul.f32 %v291_v11, %v1684_v21  ;;  %v376_v28 = vmul.f32 %v373_v17, %v367_v61  ;;  %v610_v34 = vand.u32 2147483648, %v1725_v32 }
  0x6f   : > { %v1325_v25 = vpop.eup %1324  ;;  %v1190_v15 = vadd.f32 -1.0, %v524_v50  ;;  %v467_v35 = vadd.f32 %v407_v20, %v379_v12  ;;  %v495_v36 = vmul.f32 %v492_v22, %v486_v56  ;;  %v577_v37 = vmul.f32 %v574_v16, %v574_v16  ;;  %v1167_v20 = vld [vmem:[%s1441_s16 + $0x4c] sm:$0xf] }
  0x70   : > { %v600_v38 = vmul.f32 %v1325_v25, %v1725_v32  ;;  %vm604_vm4 = vweird.f32 %v1725_v32  ;;  %vm1760_vm5 = vcmp.eq.f32.partialorder %v608_v27, 8.507059e+37  ;;  %v830_v41 = vmul.f32 1.442695, %v1220_v31 }
  0x71   : > { %v1757_v39 = vpop.eup %1326  ;;  %v918_v42 = vmul.f32 1.442695, %v1229_v23  ;;  %v461_v44 = vmul.f32 %v458_v29, %v458_v29  ;;  %vm605_vm6 = vweird.f32 %v1325_v25  ;;  %v1764_v46 = vmul.f32 %v1205_v30, %v1205_v30  ;;  %v1176_v29 = vld [vmem:[%s1441_s16 + $0x50] sm:$0xf] }
  0x72   : > { %v1329_v21 = vpop.eup %1328  ;;  %v601_v45 = vsub.f32 1.0, %v600_v38  ;;  %v382_v26 = vadd.f32 %v376_v28, %v294_v33  ;;  %v543_v48 = vmul.f32 %v1190_v15, %v1190_v15  ;;  %v611_v47 = vor.u32 1.1754944e-38, %v610_v34  ;;  %vm1771_vm7 = vmor %vm604_vm4, %vm605_vm6 }
  0x73   : > { %v688_v49 = vmul.f32 %v1329_v21, %v1735_v6  ;;  %v580_v51 = vmul.f32 %v577_v37, %v577_v37  ;;  %v698_v54 = vand.u32 2147483648, %v1735_v6  ;;  %1330 = vrcp.f32 %v1757_v39 }
  0x74   : > { %v602_v52 = vmul.f32 %v1325_v25, %v601_v45  ;;  %vm692_vm8 = vweird.f32 %v1735_v6  ;;  %vm693_vm9 = vweird.f32 %v1329_v21  ;;  %v696_v57 = vand.u32 2147483647, %v1735_v6 }
  0x75   : > { %v689_v55 = vsub.f32 1.0, %v688_v49  ;;  %v464_v56 = vmul.f32 %v461_v44, %v455_v18  ;;  %v665_v59 = vmul.f32 %v1764_v46, %v1764_v46  ;;  %v1214_v60 = vadd.f32 -1.0, %v1757_v39  ;;  %vm1782_vm10 = vmor %vm692_vm8, %vm693_vm9 }
  0x76   : > { %v603_v58 = vadd.f32 %v1325_v25, %v602_v52  ;;  %v546_v61 = vmul.f32 %v543_v48, %v543_v48  ;;  %1332 = vpow2.f32 %v830_v41  ;;  %v555_v63 = vadd.f32 %v495_v36, %v467_v35 }
  0x77   : > { %v690_v62 = vmul.f32 %v1329_v21, %v689_v55  ;;  %v583_v0 = vmul.f32 %v580_v51, %v574_v16  ;;  %v699_v2 = vor.u32 1.1754944e-38, %v698_v54  ;;  %vm697_vm11 = vcmp.eq.f32.partialorder %v696_v57, 8.507059e+37 }
  0x78   : > { %v607_v32 = vsel %vm1771_vm7, %v1325_v25, %v603_v58  ;;  %1334 = vpow2.f32 %v918_v42  ;;  %v470_v8 = vadd.f32 %v464_v56, %v382_v26  ;;  %v668_v7 = vmul.f32 %v665_v59, %v665_v59 }
  0x79   : > { %v612_v4 = vsel %vm1760_vm5, %v611_v47, %v607_v32  ;;  %v691_v5 = vadd.f32 %v1329_v21, %v690_v62  ;;  %v1331_v43 = vpop.eup %1330  ;;  %v1789_v6 = vmul.f32 %v1214_v60, %v1214_v60  ;;  %v549_v11 = vmul.f32 %v546_v61, %v546_v61 }
  0x7a   : > { %v1199_v10 = vadd.f32 -1.0, %v612_v4  ;;  %v776_v14 = vmul.f32 %v1331_v43, %v1757_v39  ;;  %v222_v13 = vmul.f32 1.442695, %v217_v3  ;;  %vm780_vm12 = vweird.f32 %v1757_v39 }
  0x7b   : > { %v695_v12 = vsel %vm1782_vm10, %v1329_v21, %v691_v5  ;;  %v786_v19 = vand.u32 2147483648, %v1757_v39  ;;  %vm781_vm13 = vweird.f32 %v1331_v43  ;;  %v784_v27 = vand.u32 2147483647, %v1757_v39 }
  0x7c   : > { %v631_v17 = vmul.f32 %v1199_v10, %v1199_v10  ;;  %v700_v18 = vsel %vm697_vm11, %v699_v2, %v695_v12  ;;  %v1797_v22 = vpop.eup %1332  ;;  %v777_v24 = vsub.f32 1.0, %v776_v14  ;;  %v753_v30 = vmul.f32 %v1789_v6, %v1789_v6  ;;  %vm1809_vm14 = vmor %vm780_vm12, %vm781_vm13 }
  0x7d   : > { %v1208_v16 = vadd.f32 -1.0, %v700_v18  ;;  %v1223_v31 = vadd.f32 -1.0, %v1797_v22  ;;  %1336 = vrcp.f32 %v1797_v22  ;;  %v552_v25 = vmul.f32 %v549_v11, %v543_v48 }
  0x7e   : > { %v634_v50 = vmul.f32 %v631_v17, %v631_v17  ;;  %v1805_v23 = vpop.eup %1334  ;;  %v778_v33 = vmul.f32 %v1331_v43, %v777_v24  ;;  %1338 = vpow2.f32 %v222_v13  ;;  %v304_v28 = vmul.f32 1.442695, %v1167_v20 }
  0x7f   : > { %v719_v15 = vmul.f32 %v1208_v16, %v1208_v16  ;;  %v787_v35 = vor.u32 1.1754944e-38, %v786_v19  ;;  %1340 = vrcp.f32 %v1805_v23  ;;  %v392_v36 = vmul.f32 1.442695, %v1176_v29 }
  0x80   : > { %v643_v37 = vadd.f32 %v583_v0, %v555_v63  ;;  %v779_v38 = vadd.f32 %v1331_v43, %v778_v33  ;;  %vm785_vm15 = vcmp.eq.f32.partialorder %v784_v27, 8.507059e+37  ;;  %v637_v40 = vmul.f32 %v634_v50, %v634_v50 }
  0x81   : > { %v671_v41 = vmul.f32 %v668_v7, %v1764_v46  ;;  %v838_v42 = vmul.f32 %v1223_v31, %v1223_v31  ;;  %v1232_v21 = vadd.f32 -1.0, %v1805_v23  ;;  %v558_v44 = vadd.f32 %v552_v25, %v470_v8 }
  0x82   : > { %v756_v45 = vmul.f32 %v753_v30, %v753_v30  ;;  %v783_v39 = vsel %vm1809_vm14, %v1331_v43, %v779_v38  ;;  %1342 = vpow2.f32 %v304_v28  ;;  %v722_v48 = vmul.f32 %v719_v15, %v719_v15 }
  0x83   : > { %v1337_v26 = vpop.eup %1336  ;;  %v788_v47 = vsel %vm785_vm15, %v787_v35, %v783_v39  ;;  %vm868_vm0 = vweird.f32 %v1797_v22  ;;  %1344 = vpow2.f32 %v392_v36  ;;  %v872_v52 = vand.u32 2147483647, %v1797_v22 }
  0x84   : > { %v1819_v49 = vpop.eup %1338  ;;  %v1217_v51 = vadd.f32 -1.0, %v788_v47  ;;  %v864_v46 = vmul.f32 %v1337_v26, %v1797_v22  ;;  %v874_v54 = vand.u32 2147483648, %v1797_v22  ;;  %v640_v55 = vmul.f32 %v637_v40, %v631_v17 }
  0x85   : > { %v1341_v53 = vpop.eup %1340  ;;  %v841_v57 = vmul.f32 %v838_v42, %v838_v42  ;;  %v926_v56 = vmul.f32 %v1232_v21, %v1232_v21  ;;  %vm956_vm1 = vweird.f32 %v1805_v23  ;;  %vm869_vm2 = vweird.f32 %v1337_v26 }
  0x86   : > { %v807_v58 = vmul.f32 %v1217_v51, %v1217_v51  ;;  %v865_v59 = vsub.f32 1.0, %v864_v46  ;;  %v952_v60 = vmul.f32 %v1341_v53, %v1805_v23  ;;  %v725_v61 = vmul.f32 %v722_v48, %v722_v48  ;;  %vm1836_vm4 = vmor %vm868_vm0, %vm869_vm2 }
  0x87   : > { %vm957_vm3 = vweird.f32 %v1341_v53  ;;  %v960_v62 = vand.u32 2147483647, %v1805_v23  ;;  %v962_v63 = vand.u32 2147483648, %v1805_v23  ;;  %1346 = vrcp.f32 %v1819_v49 }
  0x88   : > { %v1828_v0 = vpop.eup %1342  ;;  %v810_v32 = vmul.f32 %v807_v58, %v807_v58  ;;  %v866_v1 = vmul.f32 %v1337_v26, %v865_v59  ;;  %v953_v2 = vsub.f32 1.0, %v952_v60  ;;  %v731_v4 = vadd.f32 %v671_v41, %v643_v37  ;;  %vm958_vm6 = vmor %vm956_vm1, %vm957_vm3  ;;  %v1194_v59 = vld [vmem:[%s1441_s16 + $0x58] sm:$0xf]  ;;  %v1203_v60 = vld [vmem:[%s1441_s16 + $0x5c] sm:$0xf] }
  0x89   : > { %v1831_v3 = vpop.eup %1344  ;;  %v759_v5 = vmul.f32 %v756_v45, %v1789_v6  ;;  %vm873_vm5 = vcmp.eq.f32.partialorder %v872_v52, 8.507059e+37  ;;  %v875_v8 = vor.u32 1.1754944e-38, %v874_v54  ;;  %v646_v10 = vadd.f32 %v640_v55, %v558_v44 }
  0x8a   : > { %v844_v7 = vmul.f32 %v841_v57, %v841_v57  ;;  %v867_v11 = vadd.f32 %v1337_v26, %v866_v1  ;;  %v954_v12 = vmul.f32 %v1341_v53, %v953_v2  ;;  %v728_v14 = vmul.f32 %v725_v61, %v719_v15 }
  0x8b   : > { %v929_v13 = vmul.f32 %v926_v56, %v926_v56  ;;  %v963_v17 = vor.u32 1.1754944e-38, %v962_v63  ;;  %1348 = vrcp.f32 %v1828_v0  ;;  %v813_v6 = vmul.f32 %v810_v32, %v810_v32 }
  0x8c   : > { %v871_v18 = vsel %vm1836_vm4, %v1337_v26, %v867_v11  ;;  %v955_v19 = vadd.f32 %v1341_v53, %v954_v12  ;;  %vm961_vm7 = vcmp.eq.f32.partialorder %v960_v62, 8.507059e+37  ;;  %v819_v16 = vadd.f32 %v759_v5, %v731_v4 }
  0x8d   : > { %v876_v20 = vsel %vm873_vm5, %v875_v8, %v871_v18  ;;  %v1846_v22 = vpop.eup %1346  ;;  %v847_v29 = vmul.f32 %v844_v7, %v838_v42  ;;  %v932_v50 = vmul.f32 %v929_v13, %v929_v13  ;;  %v734_v23 = vadd.f32 %v728_v14, %v646_v10  ;;  %v1185_v42 = vld [vmem:[%s1441_s16 + $0x54] sm:$0xf] }
  0x8e   : > { %v1226_v24 = vadd.f32 -1.0, %v876_v20  ;;  %v959_v27 = vsel %vm958_vm6, %v1341_v53, %v955_v19  ;;  %v268_v31 = vmul.f32 %v1846_v22, %v1819_v49  ;;  %v816_v25 = vmul.f32 %v813_v6, %v807_v58  ;;  %v1212_v6 = vld [vmem:[%s1441_s16 + $0x60] sm:$0xf] }
  0x8f   : > { %v964_v30 = vsel %vm961_vm7, %v963_v17, %v959_v27  ;;  %1350 = vrcp.f32 %v1831_v3  ;;  %v907_v37 = vadd.f32 %v847_v29, %v819_v16  ;;  %v935_v38 = vmul.f32 %v932_v50, %v926_v56 }
  0x90   : > { %v895_v33 = vmul.f32 %v1226_v24, %v1226_v24  ;;  %v1235_v28 = vadd.f32 -1.0, %v964_v30  ;;  %v1161_v40 = vadd.f32 -1.0, %v1819_v49  ;;  %v269_v41 = vsub.f32 1.0, %v268_v31 }
  0x91   : > { %v1850_v15 = vpop.eup %1348  ;;  %v822_v21 = vadd.f32 %v816_v25, %v734_v23  ;;  %v480_v47 = vmul.f32 1.442695, %v1185_v42  ;;  %v995_v46 = vadd.f32 %v935_v38, %v907_v37  ;;  %vm272_vm8 = vweird.f32 %v1819_v49 }
  0x92   : > { %v898_v34 = vmul.f32 %v895_v33, %v895_v33  ;;  %v983_v35 = vmul.f32 %v1235_v28, %v1235_v28  ;;  %v350_v36 = vmul.f32 %v1850_v15, %v1828_v0  ;;  %v1859_v52 = vmul.f32 %v1161_v40, %v1161_v40 }
  0x93   : > { %v270_v54 = vmul.f32 %v1846_v22, %v269_v41  ;;  %vm273_vm9 = vweird.f32 %v1846_v22  ;;  %v1170_v56 = vadd.f32 -1.0, %v1828_v0  ;;  %vm354_vm10 = vweird.f32 %v1828_v0 }
  0x94   : > { %v901_v44 = vmul.f32 %v898_v34, %v898_v34  ;;  %v986_v45 = vmul.f32 %v983_v35, %v983_v35  ;;  %v351_v39 = vsub.f32 1.0, %v350_v36  ;;  %vm355_vm11 = vweird.f32 %v1850_v15  ;;  %vm1875_vm12 = vmor %vm272_vm8, %vm273_vm9  ;;  %v1221_v34 = vld [vmem:[%s1441_s16 + $0x64] sm:$0xf] }
  0x95   : > { %v1857_v51 = vpop.eup %1350  ;;  %v278_v62 = vand.u32 2147483648, %v1819_v49  ;;  %v360_v63 = vand.u32 2147483648, %v1828_v0  ;;  %1352 = vpow2.f32 %v480_v47  ;;  %v271_v32 = vadd.f32 %v1846_v22, %v270_v54  ;;  %vm1884_vm13 = vmor %vm354_vm10, %vm355_vm11 }
  0x96   : > { %v904_v26 = vmul.f32 %v901_v44, %v895_v33  ;;  %v989_v48 = vmul.f32 %v986_v45, %v986_v45  ;;  %v352_v53 = vmul.f32 %v1850_v15, %v351_v39  ;;  %v438_v58 = vmul.f32 %v1857_v51, %v1831_v3 }
  0x97   : > { %v276_v2 = vand.u32 2147483647, %v1819_v49  ;;  %v358_v5 = vand.u32 2147483647, %v1828_v0  ;;  %v568_v7 = vmul.f32 1.442695, %v1194_v59  ;;  %v232_v12 = vmul.f32 %v1859_v52, %v1859_v52 }
  0x98   : > { %v910_v55 = vadd.f32 %v904_v26, %v822_v21  ;;  %v992_v57 = vmul.f32 %v989_v48, %v983_v35  ;;  %v353_v4 = vadd.f32 %v1850_v15, %v352_v53  ;;  %v439_v10 = vsub.f32 1.0, %v438_v58 }
  0x99   : > { %v656_v11 = vmul.f32 1.442695, %v1203_v60  ;;  %v311_v14 = vmul.f32 %v1170_v56, %v1170_v56  ;;  %v279_v49 = vor.u32 1.1754944e-38, %v278_v62  ;;  %v361_v17 = vor.u32 1.1754944e-38, %v360_v63  ;;  %v1230_v63 = vld [vmem:[%s1441_s16 + $0x68] sm:$0xf] }
  0x9a   : > { %v998_v61 = vadd.f32 %v992_v57, %v910_v55  ;;  %1354 = vpow2.f32 %v568_v7  ;;  %v275_v0 = vsel %vm1875_vm12, %v1846_v22, %v271_v32  ;;  %vm277_vm14 = vcmp.eq.f32.partialorder %v276_v2, 8.507059e+37 }
  0x9b   : > { %v357_v18 = vsel %vm1884_vm13, %v1850_v15, %v353_v4  ;;  %vm359_vm15 = vcmp.eq.f32.partialorder %v358_v5, 8.507059e+37  ;;  %v1897_v19 = vpop.eup %1352  ;;  %v1179_v16 = vadd.f32 -1.0, %v1831_v3  ;;  %v440_v24 = vmul.f32 %v1857_v51, %v439_v10 }
  0x9c   : > { %v1001_v43 = vmul.f32 %v998_v61, %v995_v46  ;;  %1356 = vpow2.f32 %v656_v11  ;;  %v314_v27 = vmul.f32 %v311_v14, %v311_v14  ;;  %vm442_vm0 = vweird.f32 %v1831_v3 }
  0x9d   : > { %1358 = vrcp.f32 %v1897_v19  ;;  %v744_v22 = vmul.f32 1.442695, %v1212_v6  ;;  %v280_v50 = vsel %vm277_vm14, %v279_v49, %v275_v0  ;;  %v362_v30 = vsel %vm359_vm15, %v361_v17, %v357_v18 }
  0x9e   : > { %v1004_v13 = vmul.f32 0.012345679, %v1001_v43  ;;  %vm443_vm1 = vweird.f32 %v1857_v51  ;;  %v448_v31 = vand.u32 2147483648, %v1831_v3  ;;  %v235_v25 = vmul.f32 %v232_v12, %v232_v12 }
  0x9f   : > { %v399_v33 = vmul.f32 %v1179_v16, %v1179_v16  ;;  %v441_v28 = vadd.f32 %v1857_v51, %v440_v24  ;;  %v446_v15 = vand.u32 2147483647, %v1831_v3  ;;  %v1164_v35 = vadd.f32 -1.0, %v280_v50  ;;  %vm1916_vm2 = vmor %vm442_vm0, %vm443_vm1 }
  0xa0   : > { %v1010_v20 = vrot.slane %v1004_v13, 2  ;;  %v1907_v23 = vpop.eup %1354  ;;  %v317_v36 = vmul.f32 %v314_v27, %v314_v27  ;;  %v1173_v37 = vadd.f32 -1.0, %v362_v30  ;;  %1360 = vpow2.f32 %v744_v22 }
  0xa1   : > { %1362 = vrcp.f32 %v1907_v23  ;;  %v449_v42 = vor.u32 1.1754944e-38, %v448_v31  ;;  %v832_v21 = vmul.f32 1.442695, %v1221_v34  ;;  %v402_v44 = vmul.f32 %v399_v33, %v399_v33 }
  0xa2   : > { %v1903_v29 = vmax.f32 %v1004_v13, %v1010_v20  ;;  %v1920_v40 = vpop.eup %1356  ;;  %v445_v45 = vsel %vm1916_vm2, %v1857_v51, %v441_v28  ;;  %vm447_vm3 = vcmp.eq.f32.partialorder %v446_v15, 8.507059e+37  ;;  %v238_v39 = vmul.f32 %v235_v25, %v1859_v52 }
  0xa3   : > { %v1359_v41 = vpop.eup %1358  ;;  %v286_v26 = vmul.f32 %v1164_v35, %v1164_v35  ;;  %v320_v48 = vmul.f32 %v317_v36, %v311_v14  ;;  %v1928_v47 = vmul.f32 %v1173_v37, %v1173_v37  ;;  %v1188_v46 = vadd.f32 -1.0, %v1897_v19 }
  0xa4   : > { %1023 = vrot.lane.b32.xlu0 %v1903_v29, %s1400_s17  ;;  %v526_v3 = vmul.f32 %v1359_v41, %v1897_v19  ;;  %1364 = vrcp.f32 %v1920_v40  ;;  %v450_v55 = vsel %vm447_vm3, %v449_v42, %v445_v45  ;;  %vm530_vm4 = vweird.f32 %v1897_v19 }
  0xa5   : > { %vm531_vm5 = vweird.f32 %v1359_v41  ;;  %1366 = vpow2.f32 %v832_v21  ;;  %v405_v57 = vmul.f32 %v402_v44, %v402_v44  ;;  %v534_v56 = vand.u32 2147483647, %v1897_v19 }
  0xa6   : > { %v527_v54 = vsub.f32 1.0, %v526_v3  ;;  %v1932_v53 = vpop.eup %1360  ;;  %v536_v58 = vand.u32 2147483648, %v1897_v19  ;;  %v289_v59 = vmul.f32 %v286_v26, %v286_v26  ;;  %v371_v60 = vmul.f32 %v1928_v47, %v1928_v47  ;;  %vm1948_vm6 = vmor %vm530_vm4, %vm531_vm5 }
  0xa7   : > { %v1363_v51 = vpop.eup %1362  ;;  %v1939_v61 = vadd.f32 %v320_v48, %v238_v39  ;;  %v1182_v32 = vadd.f32 -1.0, %v450_v55  ;;  %v1943_v1 = vmul.f32 %v1188_v46, %v1188_v46  ;;  %vm618_vm7 = vweird.f32 %v1907_v23 }
  0xa8   : > { %v528_v52 = vmul.f32 %v1359_v41, %v527_v54  ;;  %v614_v62 = vmul.f32 %v1363_v51, %v1907_v23  ;;  %vm619_vm8 = vweird.f32 %v1363_v51  ;;  %v624_v43 = vand.u32 2147483648, %v1907_v23 }
  0xa9   : > { %1368 = vrcp.f32 %v1932_v53  ;;  %v1955_v10 = vmul.f32 %v405_v57, %v399_v33  ;;  %vm1957_vm9 = vcmp.eq.f32.partialorder %v534_v56, 8.507059e+37  ;;  %v537_v11 = vor.u32 1.1754944e-38, %v536_v58  ;;  %vm1974_vm10 = vmor %vm618_vm7, %vm619_vm8 }
  0xaa   : > { %v529_v2 = vadd.f32 %v1359_v41, %v528_v52  ;;  %v615_v5 = vsub.f32 1.0, %v614_v62  ;;  %v1365_v8 = vpop.eup %1364  ;;  %v920_v12 = vmul.f32 1.442695, %v1230_v63  ;;  %v622_v17 = vand.u32 2147483647, %v1907_v23 }
  0xab   : > { %v1961_v14 = vpop.eup %1366  ;;  %v702_v6 = vmul.f32 %v1365_v8, %v1920_v40  ;;  %v292_v0 = vmul.f32 %v289_v59, %v289_v59  ;;  %v374_v18 = vmul.f32 %v371_v60, %v371_v60  ;;  %v1967_v19 = vmul.f32 %v1182_v32, %v1182_v32 }
  0xac   : > { %v533_v13 = vsel %vm1948_vm6, %v1359_v41, %v529_v2  ;;  %v616_v49 = vmul.f32 %v1363_v51, %v615_v5  ;;  %v490_v20 = vmul.f32 %v1943_v1, %v1943_v1  ;;  %v1197_v24 = vadd.f32 -1.0, %v1907_v23 }
  0xad   : > { %v625_v22 = vor.u32 1.1754944e-38, %v624_v43  ;;  %v703_v50 = vsub.f32 1.0, %v702_v6  ;;  %v538_v30 = vsel %vm1957_vm9, %v537_v11, %v533_v13  ;;  %vm706_vm11 = vweird.f32 %v1920_v40 }
  0xae   : > { %v617_v27 = vadd.f32 %v1363_v51, %v616_v49  ;;  %vm707_vm12 = vweird.f32 %v1365_v8  ;;  %1370 = vrcp.f32 %v1961_v14  ;;  %vm623_vm13 = vcmp.eq.f32.partialorder %v622_v17, 8.507059e+37 }
  0xaf   : > { %v1369_v31 = vpop.eup %1368  ;;  %v704_v33 = vmul.f32 %v1365_v8, %v703_v50  ;;  %v712_v28 = vand.u32 2147483648, %v1920_v40  ;;  %v295_v23 = vmul.f32 %v292_v0, %v286_v26  ;;  %v459_v15 = vmul.f32 %v1967_v19, %v1967_v19  ;;  %vm1994_vm14 = vmor %vm706_vm11, %vm707_vm12 }
  0xb0   : > { %v621_v25 = vsel %vm1974_vm10, %v1363_v51, %v617_v27  ;;  %v710_v34 = vand.u32 2147483647, %v1920_v40  ;;  %v790_v35 = vmul.f32 %v1369_v31, %v1932_v53  ;;  %v1191_v36 = vadd.f32 -1.0, %v538_v30 }
  0xb1   : > { %v1990_v37 = vmul.f32 %v1197_v24, %v1197_v24  ;;  %v705_v38 = vadd.f32 %v1365_v8, %v704_v33  ;;  %vm794_vm15 = vweird.f32 %v1932_v53  ;;  %v626_v42 = vsel %vm623_vm13, %v625_v22, %v621_v25 }
  0xb2   : > { %v791_v21 = vsub.f32 1.0, %v790_v35  ;;  %vm795_vm0 = vweird.f32 %v1369_v31  ;;  %v800_v44 = vand.u32 2147483648, %v1932_v53  ;;  %v377_v45 = vmul.f32 %v374_v18, %v1928_v47 }
  0xb3   : > { %v493_v3 = vmul.f32 %v490_v20, %v490_v20  ;;  %v1206_v39 = vadd.f32 -1.0, %v1920_v40  ;;  %v713_v26 = vor.u32 1.1754944e-38, %v712_v28  ;;  %v709_v46 = vsel %vm1994_vm14, %v1365_v8, %v705_v38  ;;  %vm2007_vm2 = vmor %vm794_vm15, %vm795_vm0 }
  0xb4   : > { %v1371_v48 = vpop.eup %1370  ;;  %vm711_vm1 = vcmp.eq.f32.partialorder %v710_v34, 8.507059e+37  ;;  %v792_v54 = vmul.f32 %v1369_v31, %v791_v21  ;;  %v798_v55 = vand.u32 2147483647, %v1932_v53  ;;  %v462_v51 = vmul.f32 %v459_v15, %v459_v15 }
  0xb5   : > { %v544_v57 = vmul.f32 %v1191_v36, %v1191_v36  ;;  %v1200_v52 = vadd.f32 -1.0, %v626_v42  ;;  %v878_v40 = vmul.f32 %v1371_v48, %v1961_v14  ;;  %v578_v47 = vmul.f32 %v1990_v37, %v1990_v37 }
  0xb6   : > { %v793_v58 = vadd.f32 %v1369_v31, %v792_v54  ;;  %v801_v59 = vor.u32 1.1754944e-38, %v800_v44  ;;  %vm882_vm3 = vweird.f32 %v1961_v14  ;;  %v714_v60 = vsel %vm711_vm1, %v713_v26, %v709_v46 }
  0xb7   : > { %v879_v62 = vsub.f32 1.0, %v878_v40  ;;  %vm883_vm4 = vweird.f32 %v1371_v48  ;;  %v888_v63 = vand.u32 2147483648, %v1961_v14  ;;  %vm799_vm5 = vcmp.eq.f32.partialorder %v798_v55, 8.507059e+37 }
  0xb8   : > { %v797_v32 = vsel %vm2007_vm2, %v1369_v31, %v793_v58  ;;  %v886_v2 = vand.u32 2147483647, %v1961_v14  ;;  %1372 = vpow2.f32 %v920_v12  ;;  %v547_v4 = vmul.f32 %v544_v57, %v544_v57  ;;  %vm2023_vm6 = vmor %vm882_vm3, %vm883_vm4 }
  0xb9   : > { %v632_v5 = vmul.f32 %v1200_v52, %v1200_v52  ;;  %v663_v43 = vmul.f32 %v1206_v39, %v1206_v39  ;;  %v880_v8 = vmul.f32 %v1371_v48, %v879_v62  ;;  %v383_v7 = vadd.f32 %v377_v45, %v295_v23 }
  0xba   : > { %v468_v11 = vadd.f32 %v1955_v10, %v1939_v61  ;;  %v1209_v13 = vadd.f32 -1.0, %v714_v60  ;;  %v1215_v17 = vadd.f32 -1.0, %v1932_v53  ;;  %v802_v6 = vsel %vm799_vm5, %v801_v59, %v797_v32 }
  0xbb   : > { %v881_v0 = vadd.f32 %v1371_v48, %v880_v8  ;;  %v889_v12 = vor.u32 1.1754944e-38, %v888_v63  ;;  %v465_v18 = vmul.f32 %v462_v51, %v1967_v19  ;;  %v496_v20 = vmul.f32 %v493_v3, %v1943_v1 }
  0xbc   : > { %v581_v16 = vmul.f32 %v578_v47, %v578_v47  ;;  %vm887_vm7 = vcmp.eq.f32.partialorder %v886_v2, 8.507059e+37  ;;  %v550_v24 = vmul.f32 %v547_v4, %v547_v4  ;;  %v635_v61 = vmul.f32 %v632_v5, %v632_v5 }
  0xbd   : > { %v666_v10 = vmul.f32 %v663_v43, %v663_v43  ;;  %v885_v27 = vsel %vm2023_vm6, %v1371_v48, %v881_v0  ;;  %v720_v50 = vmul.f32 %v1209_v13, %v1209_v13  ;;  %v1218_v30 = vadd.f32 -1.0, %v802_v6 }
  0xbe   : > { %v1373_v22 = vpop.eup %1372  ;;  %v751_v31 = vmul.f32 %v1215_v17, %v1215_v17  ;;  %v1224_v53 = vadd.f32 -1.0, %v1961_v14  ;;  %v890_v25 = vsel %vm887_vm7, %v889_v12, %v885_v27  ;;  %v471_v33 = vadd.f32 %v465_v18, %v383_v7 }
  0xbf   : > { %1374 = vrcp.f32 %v1373_v22  ;;  %v556_v19 = vadd.f32 %v496_v20, %v468_v11  ;;  %v553_v28 = vmul.f32 %v550_v24, %v544_v57  ;;  %v584_v1 = vmul.f32 %v581_v16, %v1990_v37 }
  0xc0   : > { %v638_v23 = vmul.f32 %v635_v61, %v635_v61  ;;  %v669_v15 = vmul.f32 %v666_v10, %v666_v10  ;;  %v723_v34 = vmul.f32 %v720_v50, %v720_v50  ;;  %v808_v35 = vmul.f32 %v1218_v30, %v1218_v30 }
  0xc1   : > { %v1227_v36 = vadd.f32 -1.0, %v890_v25  ;;  %v754_v38 = vmul.f32 %v751_v31, %v751_v31  ;;  %v839_v41 = vmul.f32 %v1224_v53, %v1224_v53  ;;  %v1233_v42 = vadd.f32 -1.0, %v1373_v22 }
  0xc2   : > { %v559_v44 = vadd.f32 %v553_v28, %v471_v33  ;;  %v641_v45 = vmul.f32 %v638_v23, %v632_v5  ;;  %v644_v3 = vadd.f32 %v584_v1, %v556_v19  ;;  %v672_v14 = vmul.f32 %v669_v15, %v663_v43 }
  0xc3   : > { %v726_v39 = vmul.f32 %v723_v34, %v723_v34  ;;  %v811_v26 = vmul.f32 %v808_v35, %v808_v35  ;;  %v896_v48 = vmul.f32 %v1227_v36, %v1227_v36  ;;  %v757_v54 = vmul.f32 %v754_v38, %v754_v38 }
  0xc4   : > { %v842_v55 = vmul.f32 %v839_v41, %v839_v41  ;;  %vm970_vm8 = vweird.f32 %v1373_v22  ;;  %v976_v37 = vand.u32 2147483648, %v1373_v22  ;;  %v927_v51 = vmul.f32 %v1233_v42, %v1233_v42 }
  0xc5   : > { %v1375_v21 = vpop.eup %1374  ;;  %v974_v52 = vand.u32 2147483647, %v1373_v22  ;;  %v647_v56 = vadd.f32 %v641_v45, %v559_v44  ;;  %v729_v40 = vmul.f32 %v726_v39, %v720_v50  ;;  %v814_v47 = vmul.f32 %v811_v26, %v811_v26  ;;  %v1052_v39 = vld [vmem:[%s199_s21 + $0x4] sm:$0x3] }
  0xc6   : > { %v966_v46 = vmul.f32 %v1375_v21, %v1373_v22  ;;  %vm971_vm9 = vweird.f32 %v1375_v21  ;;  %v899_v58 = vmul.f32 %v896_v48, %v896_v48  ;;  %v732_v60 = vadd.f32 %v672_v14, %v644_v3  ;;  %v1050_v3 = vld [vmem:[%s199_s21] sm:$0x3]  ;;  %v1051_v14 = vld [vmem:[%s199_s21 + $0x2] sm:$0x3] }
  0xc7   : > { %v760_v62 = vmul.f32 %v757_v54, %v751_v31  ;;  %vm972_vm10 = vmor %vm970_vm8, %vm971_vm9  ;;  %v977_v63 = vor.u32 1.1754944e-38, %v976_v37  ;;  %v845_v32 = vmul.f32 %v842_v55, %v842_v55  ;;  %v930_v2 = vmul.f32 %v927_v51, %v927_v51 }
  0xc8   : > { %v967_v57 = vsub.f32 1.0, %v966_v46  ;;  %vm975_vm11 = vcmp.eq.f32.partialorder %v974_v52, 8.507059e+37  ;;  %v735_v5 = vadd.f32 %v729_v40, %v647_v56  ;;  %v817_v43 = vmul.f32 %v814_v47, %v808_v35 }
  0xc9   : > { %v902_v8 = vmul.f32 %v899_v58, %v899_v58  ;;  %v820_v13 = vadd.f32 %v760_v62, %v732_v60  ;;  %v848_v49 = vmul.f32 %v845_v32, %v839_v41  ;;  %v933_v17 = vmul.f32 %v930_v2, %v930_v2 }
  0xca   : > { %v968_v59 = vmul.f32 %v1375_v21, %v967_v57  ;;  %v823_v0 = vadd.f32 %v817_v43, %v735_v5  ;;  %vm211_vm12 = vcmask 9216   ;;  %v1401_v33 = vmov -inf  }
  0xcb   : > { %v905_v12 = vmul.f32 %v902_v8, %v896_v48  ;;  %v908_v20 = vadd.f32 %v848_v49, %v820_v13  ;;  %v936_v16 = vmul.f32 %v933_v17, %v927_v51  ;;  %212 = vst.msk [vmem:[#allocation2] sm:$0x3] %vm211_vm12, %v1401_v33  ;;  %v1053_v48 = vld [vmem:[%s199_s21 + $0x6] sm:$0x3] }
  0xcc   : > { %v969_v4 = vadd.f32 %v1375_v21, %v968_v59  ;;  %213 = vst.msk [vmem:[#allocation2 + $0x2] sm:$0x3] %vm211_vm12, %v1401_v33 }
  0xcd   : > { %v911_v61 = vadd.f32 %v905_v12, %v823_v0  ;;  %v996_v22 = vadd.f32 %v936_v16, %v908_v20  ;;  %214 = vst.msk [vmem:[#allocation2 + $0x4] sm:$0x3] %vm211_vm12, %v1401_v33 }
  0xce   : > { %v973_v7 = vsel %vm972_vm10, %v1375_v21, %v969_v4 }
  0xcf   : > { %v978_v11 = vsel %vm975_vm11, %v977_v63, %v973_v7 }
  0xd0   : > { %v1236_v6 = vadd.f32 -1.0, %v978_v11 }
  0xd2   : > { %v984_v18 = vmul.f32 %v1236_v6, %v1236_v6  ;;  %v1033_v1 = vld [vmem:[#allocation2] sm:$0x3] }
  0xd3   : > { %v1034_v35 = vld [vmem:[#allocation2 + $0x2] sm:$0x3] }
  0xd4   : > { %v987_v24 = vmul.f32 %v984_v18, %v984_v18  ;;  %v1035_v41 = vld [vmem:[#allocation2 + $0x4] sm:$0x3] }
  0xd6   : > { %v990_v10 = vmul.f32 %v987_v24, %v987_v24 }
  0xd8   : > { %v993_v27 = vmul.f32 %v990_v10, %v984_v18 }
  0xda   : > { %v999_v50 = vadd.f32 %v993_v27, %v911_v61 }
  0xdc   : > { %v1002_v30 = vmul.f32 %v999_v50, %v996_v22 }
  0xde   : > { %v1005_v31 = vmul.f32 0.012345679, %v1002_v30  ;;  %v1022_v19 = vpop.permute.xlu0 %1021 }
  0xdf   : > { %v1030_v28 = vmax.f32 %v1732_v9, %v1022_v19 }
  0xe0   : > { %v1011_v53 = vrot.slane %v1005_v31, 2 }
  0xe1   : > { %v1036_v23 = vmax.f32 %v1033_v1, %v1030_v28 }
  0xe2   : > { %v1017_v25 = vmax.f32 %v1005_v31, %v1011_v53 }
  0xe3   : > { %1040 = vst.msk [vmem:[#allocation2] sm:$0x3] %vm211_vm12, %v1036_v23 }
  0xe4   : > { %1025 = vrot.lane.b32.xlu1 %v1017_v25, %s1400_s17 }
  0xea   : > { %v1045_v9 = vld [vmem:[#allocation2] sm:$0x3] }
 0x116   : > { %v1024_v15 = vpop.permute.xlu0 %1023 }
 0x117   : > { %v1031_v34 = vmax.f32 %v1903_v29, %v1024_v15 }
 0x119   : > { %v1037_v36 = vmax.f32 %v1034_v35, %v1031_v34 }
 0x11b   : > { %1041 = vst.msk [vmem:[#allocation2 + $0x2] sm:$0x3] %vm211_vm12, %v1037_v36 }
 0x122   : > { %v1046_v44 = vld [vmem:[#allocation2 + $0x2] sm:$0x3] }
 0x123   : > { %v1048_v45 = vmin.f32 %v1045_v9, %v1046_v44 }
 0x156   : > { %v1026_v38 = vpop.permute.xlu1 %1025 }
 0x157   : > { %v1032_v42 = vmax.f32 %v1017_v25, %v1026_v38 }
 0x159   : > { %v1038_v21 = vmax.f32 %v1035_v41, %v1032_v42 }
 0x15b   : > { %1042 = vst.msk [vmem:[#allocation2 + $0x4] sm:$0x3] %vm211_vm12, %v1038_v21 }
 0x162   : > { %v1047_v29 = vld [vmem:[#allocation2 + $0x4] sm:$0x3] }
 0x163   : > { %v1049_v26 = vmin.f32 %v1048_v45, %v1047_v29 }
 0x165   : > { %v1054_v46 = vadd.f32 %v1050_v3, %v1049_v26  ;;  %v1055_v54 = vadd.f32 %v1051_v14, %v1049_v26  ;;  %v1056_v55 = vadd.f32 %v1052_v39, %v1049_v26  ;;  %v1057_v37 = vadd.f32 %v1053_v48, %v1049_v26 }
 0x167   : > { %1058 = vst.msk [vmem:[%s204_s24] sm:$0x3] %vm211_vm12, %v1054_v46 }
 0x168   : > { %1059 = vst.msk [vmem:[%s204_s24 + $0x2] sm:$0x3] %vm211_vm12, %v1055_v54 }
 0x169   : > { %1060 = vst.msk [vmem:[%s204_s24 + $0x4] sm:$0x3] %vm211_vm12, %v1056_v55 }
 0x16a   : > { %1061 = vst.msk [vmem:[%s204_s24 + $0x6] sm:$0x3] %vm211_vm12, %v1057_v37 }
 0x16b PF: > { %s12_s11 = sadd.s32 1, %s1398_s11   ;;  %s2140_s9 = smov %s1394_s10 }
 0x16c   : > { %p9_p5 = scmp.ge.s32.totalorder %s12_s11, 4   ;;  %s2141_s10 = smov %s2143_s12 }
 0x16e   :  { %11 = sbr.rel (!%p9_p5) target bundleno = 2 (0x2), region = 77 }

</bundles_post_ra>
